<compile_context>
chip_gen: v7x
topology: tpu7x:2x2x1
jax: 0.10.0
libtpu: 0.0.40
codegen_flags: <defaults>
</compile_context>

<pallas_src>
import functools

import jax
import jax.numpy as jnp
import numpy as np
from jax.experimental import pallas as pl
from jax.experimental.pallas import tpu as pltpu


def _round_up(x, m):
    return ((x + m - 1) // m) * m


# --------------------------------- kernel ---------------------------------

def _gru_recurrence_kernel(gi_ref, whh_ref, bhn_ref, out_ref, h_sc, *,
                           t_real, needs_mask, mxu_dtype, unroll):
    # gi_ref : (Tc, Bp, 3Hp)  precomputed input gates (biases folded), one chunk
    # whh_ref: (Hp, 3Hp)      recurrent weights for this direction (gate-padded)
    # bhn_ref: (1, Hp)        recurrent bias of the n gate (must stay in-loop)
    # out_ref: (Tc, Bp, Hp)   hidden outputs for this (direction, chunk)
    # h_sc   : (Bp, Hp) f32   running hidden state, persists across chunks
    Tc, Bp, _ = gi_ref.shape
    Hp = h_sc.shape[-1]

    d = pl.program_id(0)                  # 0 = forward, 1 = backward direction
    c = pl.program_id(1)                  # chunk index in processing order
    nc = pl.num_programs(1)
    reverse = d == 1
    time_chunk = jnp.where(reverse, nc - 1 - c, c)   # position on padded time axis
    chunk_t0 = time_chunk * Tc

    # h0 = 0 at the first processed chunk of each direction (PyTorch default).
    @pl.when(c == 0)
    def _():
        h_sc[...] = jnp.zeros_like(h_sc)

    # Hoist loop-invariant weight load and bias broadcast out of the serial loop.
    whh = whh_ref[...]                                    # (Hp, 3Hp), MXU dtype
    bhn = jnp.broadcast_to(bhn_ref[...], (Bp, Hp))        # (Bp, Hp) f32

    def step(t, carry):
        local = jnp.where(reverse, Tc - 1 - t, t)
        gi_t = gi_ref[local].astype(jnp.float32)          # (Bp, 3Hp), lane-aligned
        h = h_sc[...]                                     # (Bp, Hp) f32
        gh = jnp.dot(h.astype(mxu_dtype), whh,
                     preferred_element_type=jnp.float32)  # (Bp, 3Hp)

        r = jax.nn.sigmoid(gi_t[:, 0:Hp] + gh[:, 0:Hp])
        z = jax.nn.sigmoid(gi_t[:, Hp:2 * Hp] + gh[:, Hp:2 * Hp])
        n = jnp.tanh(gi_t[:, 2 * Hp:3 * Hp] + r * (gh[:, 2 * Hp:3 * Hp] + bhn))
        h_new = (1.0 - z) * n + z * h

        if needs_mask:
            # Padded time steps (only in the last time chunk) must not move h.
            valid = (chunk_t0 + local) < t_real
            h_new = jnp.where(valid, h_new, h)

        h_sc[...] = h_new
        out_ref[local] = h_new.astype(out_ref.dtype)
        return carry

    jax.lax.fori_loop(0, Tc, step, 0, unroll=unroll)


# --------------------------------- wrapper ---------------------------------

def prepare_block_rnn_params(params, mxu_dtype=jnp.bfloat16):
    """One-time weight prep: pad to TPU tiles, transpose, fold biases.

    params: (w_ih, w_hh, b_ih, b_hh) with shapes
            (D, 3H, I), (D, 3H, H), (D, 3H), (D, 3H)  (PyTorch nn.GRU layout).
    """
    w_ih, w_hh, b_ih, b_hh = params
    D, G, I = w_ih.shape
    H = G // 3
    Hp = _round_up(H, 128)     # each gate gets a full 128-lane-aligned slab
    Ip = _round_up(I, 128)

    w_ih_g = jnp.zeros((D, 3, Hp, Ip), jnp.float32).at[:, :, :H, :I].set(
        w_ih.astype(jnp.float32).reshape(D, 3, H, I))
    w_hh_g = jnp.zeros((D, 3, Hp, Hp), jnp.float32).at[:, :, :H, :H].set(
        w_hh.astype(jnp.float32).reshape(D, 3, H, H))
    b_ih_g = jnp.zeros((D, 3, Hp), jnp.float32).at[:, :, :H].set(
        b_ih.astype(jnp.float32).reshape(D, 3, H))
    b_hh_g = jnp.zeros((D, 3, Hp), jnp.float32).at[:, :, :H].set(
        b_hh.astype(jnp.float32).reshape(D, 3, H))

    # (D, Ip, 3Hp): gi = x @ wih_t, gate k in columns [k*Hp, (k+1)*Hp)
    wih_t = jnp.transpose(w_ih_g, (0, 3, 1, 2)).reshape(D, Ip, 3 * Hp)
    # (D, Hp, 3Hp): gh = h @ whh_t (same gate-aligned column layout)
    whh_t = jnp.transpose(w_hh_g, (0, 3, 1, 2)).reshape(D, Hp, 3 * Hp)

    # Fold b_ih plus the r/z parts of b_hh into the precomputed input gates;
    # only the n-gate recurrent bias must stay inside the recurrence
    # (it sits inside r * (gh_n + b_hn)).
    gate_mask = jnp.array([1.0, 1.0, 0.0], jnp.float32)[None, :, None]
    gi_bias = (b_ih_g + b_hh_g * gate_mask).reshape(D, 1, 3 * Hp)
    b_hn = b_hh_g[:, 2, :].reshape(D, 1, Hp)

    return dict(
        wih_t=wih_t.astype(mxu_dtype),
        whh_t=whh_t.astype(mxu_dtype),
        gi_bias=gi_bias,                 # f32
        b_hn=b_hn,                       # f32
        dims=(D, H, I, Hp, Ip),
        mxu_dtype=mxu_dtype,
    )


def block_rnn_forward(x, prepared, add_output=False, time_chunk=128):
    """Pallas implementation of blockRNN.forward.  x: (T, B, I) f32."""
    wih_t = prepared["wih_t"]
    whh_t = prepared["whh_t"]
    gi_bias = prepared["gi_bias"]
    b_hn = prepared["b_hn"]
    D, H, I, Hp, Ip = prepared["dims"]
    mxu_dtype = prepared["mxu_dtype"]

    T, B, _ = x.shape
    Bp = _round_up(B, 8)
    Tc = T if T <= time_chunk else time_chunk
    T_pad = _round_up(T, Tc)
    Nc = T_pad // Tc
    G3 = 3 * Hp

    # Pad input once (padded lanes/rows/steps are zero and masked/sliced away).
    x_p = jnp.zeros((T_pad, Bp, Ip), jnp.float32).at[:T, :B, :I].set(
        x.astype(jnp.float32))

    # Fused input projection for BOTH directions in one big MXU matmul (done by
    # XLA once) with r/z recurrent biases folded in.
    gi = jnp.einsum("tbi,dig->dtbg", x_p.astype(mxu_dtype), wih_t,
                    preferred_element_type=jnp.float32,
                    precision=jax.lax.Precision.HIGHEST)
    gi = (gi + gi_bias[:, :, None, :]).astype(mxu_dtype)   # (D, T_pad, Bp, 3Hp)

    unroll = max(1, min(Tc, 8))
    kernel = functools.partial(
        _gru_recurrence_kernel,
        t_real=T, needs_mask=(T_pad != T), mxu_dtype=mxu_dtype, unroll=unroll)

    def nd_chunk(d, c):
        # Backward direction consumes time chunks from the end of the sequence.
        return d * (Nc - 1 - c) + (1 - d) * c

    gi_bytes = Tc * Bp * G3 * jnp.dtype(gi.dtype).itemsize
    out_bytes = Tc * Bp * Hp * 4
    w_bytes = Hp * G3 * jnp.dtype(mxu_dtype).itemsize
    vmem_limit = int(2 * (gi_bytes + out_bytes + w_bytes + Hp * 4)
                     + Bp * Hp * 4 + (8 << 20))
    vmem_limit = min(vmem_limit, 96 * 1024 * 1024)

    out = pl.pallas_call(
        kernel,
        out_shape=jax.ShapeDtypeStruct((D, T_pad, Bp, Hp), jnp.float32),
        grid_spec=pltpu.PrefetchScalarGridSpec(
            num_scalar_prefetch=0,
            grid=(D, Nc),
            in_specs=[
                pl.BlockSpec((pl.Squeezed(), Tc, Bp, G3),
                             lambda d, c: (d, nd_chunk(d, c), 0, 0)),
                pl.BlockSpec((pl.Squeezed(), Hp, G3),
                             lambda d, c: (d, 0, 0)),
                pl.BlockSpec((pl.Squeezed(), 1, Hp),
                             lambda d, c: (d, 0, 0)),
            ],
            out_specs=pl.BlockSpec((pl.Squeezed(), Tc, Bp, Hp),
                                   lambda d, c: (d, nd_chunk(d, c), 0, 0)),
            scratch_shapes=[pltpu.VMEM((Bp, Hp), jnp.float32)],
        ),
        compiler_params=pltpu.CompilerParams(
            # directions are independent (disjoint output blocks) -> parallel
            # (uses both TCs on v7x); the chunk axis carries h -> arbitrary.
            dimension_semantics=("parallel", "arbitrary"),
            vmem_limit_bytes=vmem_limit),
    )(gi, whh_t, b_hn)

    # (D, T_pad, Bp, Hp) -> (T, B, D*H), forward half first (PyTorch layout).
    outputs = jnp.transpose(out[:, :T, :B, :H], (1, 2, 0, 3)).reshape(T, B, D * H)

    if add_output:
        half = outputs.shape[-1] // 2
        outputs = outputs[:, :, :half] + outputs[:, :, half:]
    return outputs


# ----------------------- pure-JAX reference (for checking) -----------------------

def _gru_dir_ref(x, w_ih, w_hh, b_ih, b_hh, reverse):
    H = w_hh.shape[1]
    xs = x[::-1] if reverse else x
    hi = jax.lax.Precision.HIGHEST

    def step(h, x_t):
        gi = jnp.dot(x_t, w_ih.T, precision=hi) + b_ih
        gh = jnp.dot(h, w_hh.T, precision=hi) + b_hh
        r = jax.nn.sigmoid(gi[:, :H] + gh[:, :H])
        z = jax.nn.sigmoid(gi[:, H:2 * H] + gh[:, H:2 * H])
        n = jnp.tanh(gi[:, 2 * H:] + r * gh[:, 2 * H:])
        h_new = (1.0 - z) * n + z * h
        return h_new, h_new

    h0 = jnp.zeros((x.shape[1], H), x.dtype)
    _, ys = jax.lax.scan(step, h0, xs)
    return ys[::-1] if reverse else ys


def block_rnn_reference(x, params, add_output=False):
    w_ih, w_hh, b_ih, b_hh = params
    D = w_ih.shape[0]
    outs = [_gru_dir_ref(x, w_ih[d], w_hh[d], b_ih[d], b_hh[d], reverse=(d == 1))
            for d in range(D)]
    outputs = jnp.concatenate(outs, axis=-1)
    if add_output:
        half = outputs.shape[-1] // 2
        outputs = outputs[:, :, :half] + outputs[:, :, half:]
    return outputs


def init_gru_params(key, in_size, hidden_size, num_directions):
    """Deterministic init mimicking PyTorch nn.GRU: U(-1/sqrt(H), 1/sqrt(H))."""
    k = 1.0 / np.sqrt(hidden_size)
    ks = jax.random.split(key, 4)
    w_ih = jax.random.uniform(ks[0], (num_directions, 3 * hidden_size, in_size),
                              minval=-k, maxval=k, dtype=jnp.float32)
    w_hh = jax.random.uniform(ks[1], (num_directions, 3 * hidden_size, hidden_size),
                              minval=-k, maxval=k, dtype=jnp.float32)
    b_ih = jax.random.uniform(ks[2], (num_directions, 3 * hidden_size),
                              minval=-k, maxval=k, dtype=jnp.float32)
    b_hh = jax.random.uniform(ks[3], (num_directions, 3 * hidden_size),
                              minval=-k, maxval=k, dtype=jnp.float32)
    return w_ih, w_hh, b_ih, b_hh


if __name__ == "__main__":
    key = jax.random.PRNGKey(0)
    T, B, I, H = 8, 2, 16, 32        # seq_len, batch, in_size, hidden_size
    bidirectional = True
    D = 2 if bidirectional else 1

    kx, kp = jax.random.split(key)
    x = jax.random.normal(kx, (T, B, I), dtype=jnp.float32)
    params = init_gru_params(kp, I, H, D)

    ref = block_rnn_reference(x, params, add_output=False)
    ref_add = block_rnn_reference(x, params, add_output=True)

    # f32 MXU path -- tight check against the f32 reference.
    prep32 = prepare_block_rnn_params(params, mxu_dtype=jnp.float32)
    out32 = jax.block_until_ready(block_rnn_forward(x, prep32, add_output=False))
    assert out32.shape == (T, B, D * H)
    np.testing.assert_allclose(np.asarray(out32), np.asarray(ref),
                               rtol=1e-3, atol=1e-3)

    out32_add = jax.block_until_ready(block_rnn_forward(x, prep32, add_output=True))
    np.testing.assert_allclose(np.asarray(out32_add), np.asarray(ref_add),
                               rtol=1e-3, atol=1e-3)

    # bf16 MXU operands (fast path on v6e/v7x) -- relaxed tolerance.
    prep16 = prepare_block_rnn_params(params, mxu_dtype=jnp.bfloat16)
    out16 = jax.block_until_ready(block_rnn_forward(x, prep16, add_output=False))
    np.testing.assert_allclose(np.asarray(out16), np.asarray(ref),
                               rtol=5e-2, atol=5e-2)

    print("KERNEL_OK")
</pallas_src>

<mosaic_0001>
module attributes {stable_mosaic.version = 11 : i64} {
  func.func @_gru_recurrence_kernel(%arg0: i32, %arg1: i32, %arg2: memref<1x8x8x384xf32, #tpu.memory_space<vmem>>, %arg3: memref<1x128x384xf32, #tpu.memory_space<vmem>>, %arg4: memref<1x1x128xf32, #tpu.memory_space<vmem>>, %arg5: memref<1x8x8x128xf32, #tpu.memory_space<vmem>>, %arg6: memref<8x128xf32, #tpu.memory_space<vmem>>) attributes {dimension_semantics = [#tpu.dimension_semantics<parallel>, #tpu.dimension_semantics<arbitrary>], iteration_bounds = array<i64: 2, 1>, scalar_prefetch = 0 : i64, scratch_operands = 1 : i64, tpu.core_type = #tpu.core_type<tc>, window_params = [{transform_indices = @transform_0, window_bounds = array<i64: 1, 8, 8, 384>}, {transform_indices = @transform_1, window_bounds = array<i64: 1, 128, 384>}, {transform_indices = @transform_2, window_bounds = array<i64: 1, 1, 128>}, {transform_indices = @transform_3, window_bounds = array<i64: 1, 8, 8, 128>}]} {
    %c1_i32 = arith.constant 1 : i32
    %0 = arith.cmpi eq, %arg0, %c1_i32 : i32
    %c0_i32 = arith.constant 0 : i32
    %1 = arith.cmpi eq, %arg1, %c0_i32 : i32
    %2 = arith.extui %1 : i1 to i32
    %c0_i32_0 = arith.constant 0 : i32
    %3 = arith.cmpi ne, %2, %c0_i32_0 : i32
    scf.if %3 {
      %cst_127 = arith.constant 0.000000e+00 : f32
      %322 = vector.broadcast %cst_127 : f32 to vector<8x128xf32>
      %c0_128 = arith.constant 0 : index
      %c0_129 = arith.constant 0 : index
      %323 = vector.load %arg6[%c0_128, %c0_129] : memref<8x128xf32, #tpu.memory_space<vmem>>, vector<8x128xf32>
      tpu.vector_store %arg6[%c0_128, %c0_129], %322 {strides = array<i32>} : memref<8x128xf32, #tpu.memory_space<vmem>>, vector<8x128xf32>,
    } else {
    }
    %c0 = arith.constant 0 : index
    %c0_1 = arith.constant 0 : index
    %c0_2 = arith.constant 0 : index
    %4 = vector.load %arg3[%c0, %c0_1, %c0_2] : memref<1x128x384xf32, #tpu.memory_space<vmem>>, vector<1x128x384xf32>
    %5 = vector.shape_cast %4 : vector<1x128x384xf32> to vector<128x384xf32>
    %c0_3 = arith.constant 0 : index
    %c0_4 = arith.constant 0 : index
    %c0_5 = arith.constant 0 : index
    %6 = vector.load %arg4[%c0_3, %c0_4, %c0_5] : memref<1x1x128xf32, #tpu.memory_space<vmem>>, vector<1x1x128xf32>
    %7 = vector.shape_cast %6 : vector<1x1x128xf32> to vector<1x128xf32>
    %8 = vector.shape_cast %7 : vector<1x128xf32> to vector<1x128xf32>
    %9 = vector.broadcast %8 : vector<1x128xf32> to vector<8x128xf32>
    %c0_i32_6 = arith.constant 0 : i32
    %c7_i32 = arith.constant 7 : i32
    %10 = arith.subi %c7_i32, %c0_i32_6 : i32
    %11 = arith.select %0, %10, %c0_i32_6 : i32
    %c0_7 = arith.constant 0 : index
    %12 = arith.index_cast %11 : i32 to index
    %c0_8 = arith.constant 0 : index
    %c0_9 = arith.constant 0 : index
    %13 = vector.load %arg2[%c0_7, %12, %c0_8, %c0_9] : memref<1x8x8x384xf32, #tpu.memory_space<vmem>>, vector<1x1x8x384xf32>
    %14 = vector.shape_cast %13 : vector<1x1x8x384xf32> to vector<8x384xf32>
    %c0_10 = arith.constant 0 : index
    %c0_11 = arith.constant 0 : index
    %15 = vector.load %arg6[%c0_10, %c0_11] : memref<8x128xf32, #tpu.memory_space<vmem>>, vector<8x128xf32>
    %cst = arith.constant dense<0.000000e+00> : vector<8x384xf32>
    %16 = tpu.matmul %15, %5, %cst {dimension_numbers = #tpu.dot_dimension_numbers<[1], [0], [0], [1], [0, 0, 1, 1], [], []>} : vector<8x128xf32>, vector<128x384xf32>, vector<8x384xf32> -> vector<8x384xf32>
    %17 = vector.extract_strided_slice %14 {offsets = [0, 0], sizes = [8, 128], strides = [1, 1]} : vector<8x384xf32> to vector<8x128xf32>
    %18 = vector.extract_strided_slice %16 {offsets = [0, 0], sizes = [8, 128], strides = [1, 1]} : vector<8x384xf32> to vector<8x128xf32>
    %19 = arith.addf %17, %18 : vector<8x128xf32>
    %20 = arith.negf %19 : vector<8x128xf32>
    %21 = math.exp %20 : vector<8x128xf32>
    %cst_12 = arith.constant 1.000000e+00 : f32
    %22 = vector.broadcast %cst_12 : f32 to vector<8x128xf32>
    %23 = arith.addf %22, %21 : vector<8x128xf32>
    %24 = arith.divf %22, %23 : vector<8x128xf32>
    %25 = vector.extract_strided_slice %14 {offsets = [0, 128], sizes = [8, 128], strides = [1, 1]} : vector<8x384xf32> to vector<8x128xf32>
    %26 = vector.extract_strided_slice %16 {offsets = [0, 128], sizes = [8, 128], strides = [1, 1]} : vector<8x384xf32> to vector<8x128xf32>
    %27 = arith.addf %25, %26 : vector<8x128xf32>
    %28 = arith.negf %27 : vector<8x128xf32>
    %29 = math.exp %28 : vector<8x128xf32>
    %cst_13 = arith.constant 1.000000e+00 : f32
    %30 = vector.broadcast %cst_13 : f32 to vector<8x128xf32>
    %31 = arith.addf %30, %29 : vector<8x128xf32>
    %32 = arith.divf %30, %31 : vector<8x128xf32>
    %33 = vector.extract_strided_slice %14 {offsets = [0, 256], sizes = [8, 128], strides = [1, 1]} : vector<8x384xf32> to vector<8x128xf32>
    %34 = vector.extract_strided_slice %16 {offsets = [0, 256], sizes = [8, 128], strides = [1, 1]} : vector<8x384xf32> to vector<8x128xf32>
    %35 = arith.addf %34, %9 : vector<8x128xf32>
    %36 = arith.mulf %24, %35 : vector<8x128xf32>
    %37 = arith.addf %33, %36 : vector<8x128xf32>
    %38 = math.tanh %37 : vector<8x128xf32>
    %cst_14 = arith.constant 1.000000e+00 : f32
    %39 = vector.broadcast %cst_14 : f32 to vector<8x128xf32>
    %40 = arith.subf %39, %32 : vector<8x128xf32>
    %41 = arith.mulf %40, %38 : vector<8x128xf32>
    %42 = arith.mulf %32, %15 : vector<8x128xf32>
    %43 = arith.addf %41, %42 : vector<8x128xf32>
    %c0_15 = arith.constant 0 : index
    %c0_16 = arith.constant 0 : index
    %44 = vector.load %arg6[%c0_15, %c0_16] : memref<8x128xf32, #tpu.memory_space<vmem>>, vector<8x128xf32>
    tpu.vector_store %arg6[%c0_15, %c0_16], %43 {strides = array<i32>} : memref<8x128xf32, #tpu.memory_space<vmem>>, vector<8x128xf32>,
    %c0_17 = arith.constant 0 : index
    %45 = arith.index_cast %11 : i32 to index
    %c0_18 = arith.constant 0 : index
    %c0_19 = arith.constant 0 : index
    %46 = vector.load %arg5[%c0_17, %45, %c0_18, %c0_19] : memref<1x8x8x128xf32, #tpu.memory_space<vmem>>, vector<1x1x8x128xf32>
    %47 = vector.shape_cast %46 : vector<1x1x8x128xf32> to vector<8x128xf32>
    %48 = vector.shape_cast %43 : vector<8x128xf32> to vector<1x1x8x128xf32>
    tpu.vector_store %arg5[%c0_17, %45, %c0_18, %c0_19], %48 {strides = array<i32>} : memref<1x8x8x128xf32, #tpu.memory_space<vmem>>, vector<1x1x8x128xf32>,
    %c1_i32_20 = arith.constant 1 : i32
    %c7_i32_21 = arith.constant 7 : i32
    %49 = arith.subi %c7_i32_21, %c1_i32_20 : i32
    %50 = arith.select %0, %49, %c1_i32_20 : i32
    %c0_22 = arith.constant 0 : index
    %51 = arith.index_cast %50 : i32 to index
    %c0_23 = arith.constant 0 : index
    %c0_24 = arith.constant 0 : index
    %52 = vector.load %arg2[%c0_22, %51, %c0_23, %c0_24] : memref<1x8x8x384xf32, #tpu.memory_space<vmem>>, vector<1x1x8x384xf32>
    %53 = vector.shape_cast %52 : vector<1x1x8x384xf32> to vector<8x384xf32>
    %c0_25 = arith.constant 0 : index
    %c0_26 = arith.constant 0 : index
    %54 = vector.load %arg6[%c0_25, %c0_26] : memref<8x128xf32, #tpu.memory_space<vmem>>, vector<8x128xf32>
    %cst_27 = arith.constant dense<0.000000e+00> : vector<8x384xf32>
    %55 = tpu.matmul %54, %5, %cst_27 {dimension_numbers = #tpu.dot_dimension_numbers<[1], [0], [0], [1], [0, 0, 1, 1], [], []>} : vector<8x128xf32>, vector<128x384xf32>, vector<8x384xf32> -> vector<8x384xf32>
    %56 = vector.extract_strided_slice %53 {offsets = [0, 0], sizes = [8, 128], strides = [1, 1]} : vector<8x384xf32> to vector<8x128xf32>
    %57 = vector.extract_strided_slice %55 {offsets = [0, 0], sizes = [8, 128], strides = [1, 1]} : vector<8x384xf32> to vector<8x128xf32>
    %58 = arith.addf %56, %57 : vector<8x128xf32>
    %59 = arith.negf %58 : vector<8x128xf32>
    %60 = math.exp %59 : vector<8x128xf32>
    %cst_28 = arith.constant 1.000000e+00 : f32
    %61 = vector.broadcast %cst_28 : f32 to vector<8x128xf32>
    %62 = arith.addf %61, %60 : vector<8x128xf32>
    %63 = arith.divf %61, %62 : vector<8x128xf32>
    %64 = vector.extract_strided_slice %53 {offsets = [0, 128], sizes = [8, 128], strides = [1, 1]} : vector<8x384xf32> to vector<8x128xf32>
    %65 = vector.extract_strided_slice %55 {offsets = [0, 128], sizes = [8, 128], strides = [1, 1]} : vector<8x384xf32> to vector<8x128xf32>
    %66 = arith.addf %64, %65 : vector<8x128xf32>
    %67 = arith.negf %66 : vector<8x128xf32>
    %68 = math.exp %67 : vector<8x128xf32>
    %cst_29 = arith.constant 1.000000e+00 : f32
    %69 = vector.broadcast %cst_29 : f32 to vector<8x128xf32>
    %70 = arith.addf %69, %68 : vector<8x128xf32>
    %71 = arith.divf %69, %70 : vector<8x128xf32>
    %72 = vector.extract_strided_slice %53 {offsets = [0, 256], sizes = [8, 128], strides = [1, 1]} : vector<8x384xf32> to vector<8x128xf32>
    %73 = vector.extract_strided_slice %55 {offsets = [0, 256], sizes = [8, 128], strides = [1, 1]} : vector<8x384xf32> to vector<8x128xf32>
    %74 = arith.addf %73, %9 : vector<8x128xf32>
    %75 = arith.mulf %63, %74 : vector<8x128xf32>
    %76 = arith.addf %72, %75 : vector<8x128xf32>
    %77 = math.tanh %76 : vector<8x128xf32>
    %cst_30 = arith.constant 1.000000e+00 : f32
    %78 = vector.broadcast %cst_30 : f32 to vector<8x128xf32>
    %79 = arith.subf %78, %71 : vector<8x128xf32>
    %80 = arith.mulf %79, %77 : vector<8x128xf32>
    %81 = arith.mulf %71, %54 : vector<8x128xf32>
    %82 = arith.addf %80, %81 : vector<8x128xf32>
    %c0_31 = arith.constant 0 : index
    %c0_32 = arith.constant 0 : index
    %83 = vector.load %arg6[%c0_31, %c0_32] : memref<8x128xf32, #tpu.memory_space<vmem>>, vector<8x128xf32>
    tpu.vector_store %arg6[%c0_31, %c0_32], %82 {strides = array<i32>} : memref<8x128xf32, #tpu.memory_space<vmem>>, vector<8x128xf32>,
    %c0_33 = arith.constant 0 : index
    %84 = arith.index_cast %50 : i32 to index
    %c0_34 = arith.constant 0 : index
    %c0_35 = arith.constant 0 : index
    %85 = vector.load %arg5[%c0_33, %84, %c0_34, %c0_35] : memref<1x8x8x128xf32, #tpu.memory_space<vmem>>, vector<1x1x8x128xf32>
    %86 = vector.shape_cast %85 : vector<1x1x8x128xf32> to vector<8x128xf32>
    %87 = vector.shape_cast %82 : vector<8x128xf32> to vector<1x1x8x128xf32>
    tpu.vector_store %arg5[%c0_33, %84, %c0_34, %c0_35], %87 {strides = array<i32>} : memref<1x8x8x128xf32, #tpu.memory_space<vmem>>, vector<1x1x8x128xf32>,
    %c2_i32 = arith.constant 2 : i32
    %c7_i32_36 = arith.constant 7 : i32
    %88 = arith.subi %c7_i32_36, %c2_i32 : i32
    %89 = arith.select %0, %88, %c2_i32 : i32
    %c0_37 = arith.constant 0 : index
    %90 = arith.index_cast %89 : i32 to index
    %c0_38 = arith.constant 0 : index
    %c0_39 = arith.constant 0 : index
    %91 = vector.load %arg2[%c0_37, %90, %c0_38, %c0_39] : memref<1x8x8x384xf32, #tpu.memory_space<vmem>>, vector<1x1x8x384xf32>
    %92 = vector.shape_cast %91 : vector<1x1x8x384xf32> to vector<8x384xf32>
    %c0_40 = arith.constant 0 : index
    %c0_41 = arith.constant 0 : index
    %93 = vector.load %arg6[%c0_40, %c0_41] : memref<8x128xf32, #tpu.memory_space<vmem>>, vector<8x128xf32>
    %cst_42 = arith.constant dense<0.000000e+00> : vector<8x384xf32>
    %94 = tpu.matmul %93, %5, %cst_42 {dimension_numbers = #tpu.dot_dimension_numbers<[1], [0], [0], [1], [0, 0, 1, 1], [], []>} : vector<8x128xf32>, vector<128x384xf32>, vector<8x384xf32> -> vector<8x384xf32>
    %95 = vector.extract_strided_slice %92 {offsets = [0, 0], sizes = [8, 128], strides = [1, 1]} : vector<8x384xf32> to vector<8x128xf32>
    %96 = vector.extract_strided_slice %94 {offsets = [0, 0], sizes = [8, 128], strides = [1, 1]} : vector<8x384xf32> to vector<8x128xf32>
    %97 = arith.addf %95, %96 : vector<8x128xf32>
    %98 = arith.negf %97 : vector<8x128xf32>
    %99 = math.exp %98 : vector<8x128xf32>
    %cst_43 = arith.constant 1.000000e+00 : f32
    %100 = vector.broadcast %cst_43 : f32 to vector<8x128xf32>
    %101 = arith.addf %100, %99 : vector<8x128xf32>
    %102 = arith.divf %100, %101 : vector<8x128xf32>
    %103 = vector.extract_strided_slice %92 {offsets = [0, 128], sizes = [8, 128], strides = [1, 1]} : vector<8x384xf32> to vector<8x128xf32>
    %104 = vector.extract_strided_slice %94 {offsets = [0, 128], sizes = [8, 128], strides = [1, 1]} : vector<8x384xf32> to vector<8x128xf32>
    %105 = arith.addf %103, %104 : vector<8x128xf32>
    %106 = arith.negf %105 : vector<8x128xf32>
    %107 = math.exp %106 : vector<8x128xf32>
    %cst_44 = arith.constant 1.000000e+00 : f32
    %108 = vector.broadcast %cst_44 : f32 to vector<8x128xf32>
    %109 = arith.addf %108, %107 : vector<8x128xf32>
    %110 = arith.divf %108, %109 : vector<8x128xf32>
    %111 = vector.extract_strided_slice %92 {offsets = [0, 256], sizes = [8, 128], strides = [1, 1]} : vector<8x384xf32> to vector<8x128xf32>
    %112 = vector.extract_strided_slice %94 {offsets = [0, 256], sizes = [8, 128], strides = [1, 1]} : vector<8x384xf32> to vector<8x128xf32>
    %113 = arith.addf %112, %9 : vector<8x128xf32>
    %114 = arith.mulf %102, %113 : vector<8x128xf32>
    %115 = arith.addf %111, %114 : vector<8x128xf32>
    %116 = math.tanh %115 : vector<8x128xf32>
    %cst_45 = arith.constant 1.000000e+00 : f32
    %117 = vector.broadcast %cst_45 : f32 to vector<8x128xf32>
    %118 = arith.subf %117, %110 : vector<8x128xf32>
    %119 = arith.mulf %118, %116 : vector<8x128xf32>
    %120 = arith.mulf %110, %93 : vector<8x128xf32>
    %121 = arith.addf %119, %120 : vector<8x128xf32>
    %c0_46 = arith.constant 0 : index
    %c0_47 = arith.constant 0 : index
    %122 = vector.load %arg6[%c0_46, %c0_47] : memref<8x128xf32, #tpu.memory_space<vmem>>, vector<8x128xf32>
    tpu.vector_store %arg6[%c0_46, %c0_47], %121 {strides = array<i32>} : memref<8x128xf32, #tpu.memory_space<vmem>>, vector<8x128xf32>,
    %c0_48 = arith.constant 0 : index
    %123 = arith.index_cast %89 : i32 to index
    %c0_49 = arith.constant 0 : index
    %c0_50 = arith.constant 0 : index
    %124 = vector.load %arg5[%c0_48, %123, %c0_49, %c0_50] : memref<1x8x8x128xf32, #tpu.memory_space<vmem>>, vector<1x1x8x128xf32>
    %125 = vector.shape_cast %124 : vector<1x1x8x128xf32> to vector<8x128xf32>
    %126 = vector.shape_cast %121 : vector<8x128xf32> to vector<1x1x8x128xf32>
    tpu.vector_store %arg5[%c0_48, %123, %c0_49, %c0_50], %126 {strides = array<i32>} : memref<1x8x8x128xf32, #tpu.memory_space<vmem>>, vector<1x1x8x128xf32>,
    %c3_i32 = arith.constant 3 : i32
    %c7_i32_51 = arith.constant 7 : i32
    %127 = arith.subi %c7_i32_51, %c3_i32 : i32
    %128 = arith.select %0, %127, %c3_i32 : i32
    %c0_52 = arith.constant 0 : index
    %129 = arith.index_cast %128 : i32 to index
    %c0_53 = arith.constant 0 : index
    %c0_54 = arith.constant 0 : index
    %130 = vector.load %arg2[%c0_52, %129, %c0_53, %c0_54] : memref<1x8x8x384xf32, #tpu.memory_space<vmem>>, vector<1x1x8x384xf32>
    %131 = vector.shape_cast %130 : vector<1x1x8x384xf32> to vector<8x384xf32>
    %c0_55 = arith.constant 0 : index
    %c0_56 = arith.constant 0 : index
    %132 = vector.load %arg6[%c0_55, %c0_56] : memref<8x128xf32, #tpu.memory_space<vmem>>, vector<8x128xf32>
    %cst_57 = arith.constant dense<0.000000e+00> : vector<8x384xf32>
    %133 = tpu.matmul %132, %5, %cst_57 {dimension_numbers = #tpu.dot_dimension_numbers<[1], [0], [0], [1], [0, 0, 1, 1], [], []>} : vector<8x128xf32>, vector<128x384xf32>, vector<8x384xf32> -> vector<8x384xf32>
    %134 = vector.extract_strided_slice %131 {offsets = [0, 0], sizes = [8, 128], strides = [1, 1]} : vector<8x384xf32> to vector<8x128xf32>
    %135 = vector.extract_strided_slice %133 {offsets = [0, 0], sizes = [8, 128], strides = [1, 1]} : vector<8x384xf32> to vector<8x128xf32>
    %136 = arith.addf %134, %135 : vector<8x128xf32>
    %137 = arith.negf %136 : vector<8x128xf32>
    %138 = math.exp %137 : vector<8x128xf32>
    %cst_58 = arith.constant 1.000000e+00 : f32
    %139 = vector.broadcast %cst_58 : f32 to vector<8x128xf32>
    %140 = arith.addf %139, %138 : vector<8x128xf32>
    %141 = arith.divf %139, %140 : vector<8x128xf32>
    %142 = vector.extract_strided_slice %131 {offsets = [0, 128], sizes = [8, 128], strides = [1, 1]} : vector<8x384xf32> to vector<8x128xf32>
    %143 = vector.extract_strided_slice %133 {offsets = [0, 128], sizes = [8, 128], strides = [1, 1]} : vector<8x384xf32> to vector<8x128xf32>
    %144 = arith.addf %142, %143 : vector<8x128xf32>
    %145 = arith.negf %144 : vector<8x128xf32>
    %146 = math.exp %145 : vector<8x128xf32>
    %cst_59 = arith.constant 1.000000e+00 : f32
    %147 = vector.broadcast %cst_59 : f32 to vector<8x128xf32>
    %148 = arith.addf %147, %146 : vector<8x128xf32>
    %149 = arith.divf %147, %148 : vector<8x128xf32>
    %150 = vector.extract_strided_slice %131 {offsets = [0, 256], sizes = [8, 128], strides = [1, 1]} : vector<8x384xf32> to vector<8x128xf32>
    %151 = vector.extract_strided_slice %133 {offsets = [0, 256], sizes = [8, 128], strides = [1, 1]} : vector<8x384xf32> to vector<8x128xf32>
    %152 = arith.addf %151, %9 : vector<8x128xf32>
    %153 = arith.mulf %141, %152 : vector<8x128xf32>
    %154 = arith.addf %150, %153 : vector<8x128xf32>
    %155 = math.tanh %154 : vector<8x128xf32>
    %cst_60 = arith.constant 1.000000e+00 : f32
    %156 = vector.broadcast %cst_60 : f32 to vector<8x128xf32>
    %157 = arith.subf %156, %149 : vector<8x128xf32>
    %158 = arith.mulf %157, %155 : vector<8x128xf32>
    %159 = arith.mulf %149, %132 : vector<8x128xf32>
    %160 = arith.addf %158, %159 : vector<8x128xf32>
    %c0_61 = arith.constant 0 : index
    %c0_62 = arith.constant 0 : index
    %161 = vector.load %arg6[%c0_61, %c0_62] : memref<8x128xf32, #tpu.memory_space<vmem>>, vector<8x128xf32>
    tpu.vector_store %arg6[%c0_61, %c0_62], %160 {strides = array<i32>} : memref<8x128xf32, #tpu.memory_space<vmem>>, vector<8x128xf32>,
    %c0_63 = arith.constant 0 : index
    %162 = arith.index_cast %128 : i32 to index
    %c0_64 = arith.constant 0 : index
    %c0_65 = arith.constant 0 : index
    %163 = vector.load %arg5[%c0_63, %162, %c0_64, %c0_65] : memref<1x8x8x128xf32, #tpu.memory_space<vmem>>, vector<1x1x8x128xf32>
    %164 = vector.shape_cast %163 : vector<1x1x8x128xf32> to vector<8x128xf32>
    %165 = vector.shape_cast %160 : vector<8x128xf32> to vector<1x1x8x128xf32>
    tpu.vector_store %arg5[%c0_63, %162, %c0_64, %c0_65], %165 {strides = array<i32>} : memref<1x8x8x128xf32, #tpu.memory_space<vmem>>, vector<1x1x8x128xf32>,
    %c4_i32 = arith.constant 4 : i32
    %c7_i32_66 = arith.constant 7 : i32
    %166 = arith.subi %c7_i32_66, %c4_i32 : i32
    %167 = arith.select %0, %166, %c4_i32 : i32
    %c0_67 = arith.constant 0 : index
    %168 = arith.index_cast %167 : i32 to index
    %c0_68 = arith.constant 0 : index
    %c0_69 = arith.constant 0 : index
    %169 = vector.load %arg2[%c0_67, %168, %c0_68, %c0_69] : memref<1x8x8x384xf32, #tpu.memory_space<vmem>>, vector<1x1x8x384xf32>
    %170 = vector.shape_cast %169 : vector<1x1x8x384xf32> to vector<8x384xf32>
    %c0_70 = arith.constant 0 : index
    %c0_71 = arith.constant 0 : index
    %171 = vector.load %arg6[%c0_70, %c0_71] : memref<8x128xf32, #tpu.memory_space<vmem>>, vector<8x128xf32>
    %cst_72 = arith.constant dense<0.000000e+00> : vector<8x384xf32>
    %172 = tpu.matmul %171, %5, %cst_72 {dimension_numbers = #tpu.dot_dimension_numbers<[1], [0], [0], [1], [0, 0, 1, 1], [], []>} : vector<8x128xf32>, vector<128x384xf32>, vector<8x384xf32> -> vector<8x384xf32>
    %173 = vector.extract_strided_slice %170 {offsets = [0, 0], sizes = [8, 128], strides = [1, 1]} : vector<8x384xf32> to vector<8x128xf32>
    %174 = vector.extract_strided_slice %172 {offsets = [0, 0], sizes = [8, 128], strides = [1, 1]} : vector<8x384xf32> to vector<8x128xf32>
    %175 = arith.addf %173, %174 : vector<8x128xf32>
    %176 = arith.negf %175 : vector<8x128xf32>
    %177 = math.exp %176 : vector<8x128xf32>
    %cst_73 = arith.constant 1.000000e+00 : f32
    %178 = vector.broadcast %cst_73 : f32 to vector<8x128xf32>
    %179 = arith.addf %178, %177 : vector<8x128xf32>
    %180 = arith.divf %178, %179 : vector<8x128xf32>
    %181 = vector.extract_strided_slice %170 {offsets = [0, 128], sizes = [8, 128], strides = [1, 1]} : vector<8x384xf32> to vector<8x128xf32>
    %182 = vector.extract_strided_slice %172 {offsets = [0, 128], sizes = [8, 128], strides = [1, 1]} : vector<8x384xf32> to vector<8x128xf32>
    %183 = arith.addf %181, %182 : vector<8x128xf32>
    %184 = arith.negf %183 : vector<8x128xf32>
    %185 = math.exp %184 : vector<8x128xf32>
    %cst_74 = arith.constant 1.000000e+00 : f32
    %186 = vector.broadcast %cst_74 : f32 to vector<8x128xf32>
    %187 = arith.addf %186, %185 : vector<8x128xf32>
    %188 = arith.divf %186, %187 : vector<8x128xf32>
    %189 = vector.extract_strided_slice %170 {offsets = [0, 256], sizes = [8, 128], strides = [1, 1]} : vector<8x384xf32> to vector<8x128xf32>
    %190 = vector.extract_strided_slice %172 {offsets = [0, 256], sizes = [8, 128], strides = [1, 1]} : vector<8x384xf32> to vector<8x128xf32>
    %191 = arith.addf %190, %9 : vector<8x128xf32>
    %192 = arith.mulf %180, %191 : vector<8x128xf32>
    %193 = arith.addf %189, %192 : vector<8x128xf32>
    %194 = math.tanh %193 : vector<8x128xf32>
    %cst_75 = arith.constant 1.000000e+00 : f32
    %195 = vector.broadcast %cst_75 : f32 to vector<8x128xf32>
    %196 = arith.subf %195, %188 : vector<8x128xf32>
    %197 = arith.mulf %196, %194 : vector<8x128xf32>
    %198 = arith.mulf %188, %171 : vector<8x128xf32>
    %199 = arith.addf %197, %198 : vector<8x128xf32>
    %c0_76 = arith.constant 0 : index
    %c0_77 = arith.constant 0 : index
    %200 = vector.load %arg6[%c0_76, %c0_77] : memref<8x128xf32, #tpu.memory_space<vmem>>, vector<8x128xf32>
    tpu.vector_store %arg6[%c0_76, %c0_77], %199 {strides = array<i32>} : memref<8x128xf32, #tpu.memory_space<vmem>>, vector<8x128xf32>,
    %c0_78 = arith.constant 0 : index
    %201 = arith.index_cast %167 : i32 to index
    %c0_79 = arith.constant 0 : index
    %c0_80 = arith.constant 0 : index
    %202 = vector.load %arg5[%c0_78, %201, %c0_79, %c0_80] : memref<1x8x8x128xf32, #tpu.memory_space<vmem>>, vector<1x1x8x128xf32>
    %203 = vector.shape_cast %202 : vector<1x1x8x128xf32> to vector<8x128xf32>
    %204 = vector.shape_cast %199 : vector<8x128xf32> to vector<1x1x8x128xf32>
    tpu.vector_store %arg5[%c0_78, %201, %c0_79, %c0_80], %204 {strides = array<i32>} : memref<1x8x8x128xf32, #tpu.memory_space<vmem>>, vector<1x1x8x128xf32>,
    %c5_i32 = arith.constant 5 : i32
    %c7_i32_81 = arith.constant 7 : i32
    %205 = arith.subi %c7_i32_81, %c5_i32 : i32
    %206 = arith.select %0, %205, %c5_i32 : i32
    %c0_82 = arith.constant 0 : index
    %207 = arith.index_cast %206 : i32 to index
    %c0_83 = arith.constant 0 : index
    %c0_84 = arith.constant 0 : index
    %208 = vector.load %arg2[%c0_82, %207, %c0_83, %c0_84] : memref<1x8x8x384xf32, #tpu.memory_space<vmem>>, vector<1x1x8x384xf32>
    %209 = vector.shape_cast %208 : vector<1x1x8x384xf32> to vector<8x384xf32>
    %c0_85 = arith.constant 0 : index
    %c0_86 = arith.constant 0 : index
    %210 = vector.load %arg6[%c0_85, %c0_86] : memref<8x128xf32, #tpu.memory_space<vmem>>, vector<8x128xf32>
    %cst_87 = arith.constant dense<0.000000e+00> : vector<8x384xf32>
    %211 = tpu.matmul %210, %5, %cst_87 {dimension_numbers = #tpu.dot_dimension_numbers<[1], [0], [0], [1], [0, 0, 1, 1], [], []>} : vector<8x128xf32>, vector<128x384xf32>, vector<8x384xf32> -> vector<8x384xf32>
    %212 = vector.extract_strided_slice %209 {offsets = [0, 0], sizes = [8, 128], strides = [1, 1]} : vector<8x384xf32> to vector<8x128xf32>
    %213 = vector.extract_strided_slice %211 {offsets = [0, 0], sizes = [8, 128], strides = [1, 1]} : vector<8x384xf32> to vector<8x128xf32>
    %214 = arith.addf %212, %213 : vector<8x128xf32>
    %215 = arith.negf %214 : vector<8x128xf32>
    %216 = math.exp %215 : vector<8x128xf32>
    %cst_88 = arith.constant 1.000000e+00 : f32
    %217 = vector.broadcast %cst_88 : f32 to vector<8x128xf32>
    %218 = arith.addf %217, %216 : vector<8x128xf32>
    %219 = arith.divf %217, %218 : vector<8x128xf32>
    %220 = vector.extract_strided_slice %209 {offsets = [0, 128], sizes = [8, 128], strides = [1, 1]} : vector<8x384xf32> to vector<8x128xf32>
    %221 = vector.extract_strided_slice %211 {offsets = [0, 128], sizes = [8, 128], strides = [1, 1]} : vector<8x384xf32> to vector<8x128xf32>
    %222 = arith.addf %220, %221 : vector<8x128xf32>
    %223 = arith.negf %222 : vector<8x128xf32>
    %224 = math.exp %223 : vector<8x128xf32>
    %cst_89 = arith.constant 1.000000e+00 : f32
    %225 = vector.broadcast %cst_89 : f32 to vector<8x128xf32>
    %226 = arith.addf %225, %224 : vector<8x128xf32>
    %227 = arith.divf %225, %226 : vector<8x128xf32>
    %228 = vector.extract_strided_slice %209 {offsets = [0, 256], sizes = [8, 128], strides = [1, 1]} : vector<8x384xf32> to vector<8x128xf32>
    %229 = vector.extract_strided_slice %211 {offsets = [0, 256], sizes = [8, 128], strides = [1, 1]} : vector<8x384xf32> to vector<8x128xf32>
    %230 = arith.addf %229, %9 : vector<8x128xf32>
    %231 = arith.mulf %219, %230 : vector<8x128xf32>
    %232 = arith.addf %228, %231 : vector<8x128xf32>
    %233 = math.tanh %232 : vector<8x128xf32>
    %cst_90 = arith.constant 1.000000e+00 : f32
    %234 = vector.broadcast %cst_90 : f32 to vector<8x128xf32>
    %235 = arith.subf %234, %227 : vector<8x128xf32>
    %236 = arith.mulf %235, %233 : vector<8x128xf32>
    %237 = arith.mulf %227, %210 : vector<8x128xf32>
    %238 = arith.addf %236, %237 : vector<8x128xf32>
    %c0_91 = arith.constant 0 : index
    %c0_92 = arith.constant 0 : index
    %239 = vector.load %arg6[%c0_91, %c0_92] : memref<8x128xf32, #tpu.memory_space<vmem>>, vector<8x128xf32>
    tpu.vector_store %arg6[%c0_91, %c0_92], %238 {strides = array<i32>} : memref<8x128xf32, #tpu.memory_space<vmem>>, vector<8x128xf32>,
    %c0_93 = arith.constant 0 : index
    %240 = arith.index_cast %206 : i32 to index
    %c0_94 = arith.constant 0 : index
    %c0_95 = arith.constant 0 : index
    %241 = vector.load %arg5[%c0_93, %240, %c0_94, %c0_95] : memref<1x8x8x128xf32, #tpu.memory_space<vmem>>, vector<1x1x8x128xf32>
    %242 = vector.shape_cast %241 : vector<1x1x8x128xf32> to vector<8x128xf32>
    %243 = vector.shape_cast %238 : vector<8x128xf32> to vector<1x1x8x128xf32>
    tpu.vector_store %arg5[%c0_93, %240, %c0_94, %c0_95], %243 {strides = array<i32>} : memref<1x8x8x128xf32, #tpu.memory_space<vmem>>, vector<1x1x8x128xf32>,
    %c6_i32 = arith.constant 6 : i32
    %c7_i32_96 = arith.constant 7 : i32
    %244 = arith.subi %c7_i32_96, %c6_i32 : i32
    %245 = arith.select %0, %244, %c6_i32 : i32
    %c0_97 = arith.constant 0 : index
    %246 = arith.index_cast %245 : i32 to index
    %c0_98 = arith.constant 0 : index
    %c0_99 = arith.constant 0 : index
    %247 = vector.load %arg2[%c0_97, %246, %c0_98, %c0_99] : memref<1x8x8x384xf32, #tpu.memory_space<vmem>>, vector<1x1x8x384xf32>
    %248 = vector.shape_cast %247 : vector<1x1x8x384xf32> to vector<8x384xf32>
    %c0_100 = arith.constant 0 : index
    %c0_101 = arith.constant 0 : index
    %249 = vector.load %arg6[%c0_100, %c0_101] : memref<8x128xf32, #tpu.memory_space<vmem>>, vector<8x128xf32>
    %cst_102 = arith.constant dense<0.000000e+00> : vector<8x384xf32>
    %250 = tpu.matmul %249, %5, %cst_102 {dimension_numbers = #tpu.dot_dimension_numbers<[1], [0], [0], [1], [0, 0, 1, 1], [], []>} : vector<8x128xf32>, vector<128x384xf32>, vector<8x384xf32> -> vector<8x384xf32>
    %251 = vector.extract_strided_slice %248 {offsets = [0, 0], sizes = [8, 128], strides = [1, 1]} : vector<8x384xf32> to vector<8x128xf32>
    %252 = vector.extract_strided_slice %250 {offsets = [0, 0], sizes = [8, 128], strides = [1, 1]} : vector<8x384xf32> to vector<8x128xf32>
    %253 = arith.addf %251, %252 : vector<8x128xf32>
    %254 = arith.negf %253 : vector<8x128xf32>
    %255 = math.exp %254 : vector<8x128xf32>
    %cst_103 = arith.constant 1.000000e+00 : f32
    %256 = vector.broadcast %cst_103 : f32 to vector<8x128xf32>
    %257 = arith.addf %256, %255 : vector<8x128xf32>
    %258 = arith.divf %256, %257 : vector<8x128xf32>
    %259 = vector.extract_strided_slice %248 {offsets = [0, 128], sizes = [8, 128], strides = [1, 1]} : vector<8x384xf32> to vector<8x128xf32>
    %260 = vector.extract_strided_slice %250 {offsets = [0, 128], sizes = [8, 128], strides = [1, 1]} : vector<8x384xf32> to vector<8x128xf32>
    %261 = arith.addf %259, %260 : vector<8x128xf32>
    %262 = arith.negf %261 : vector<8x128xf32>
    %263 = math.exp %262 : vector<8x128xf32>
    %cst_104 = arith.constant 1.000000e+00 : f32
    %264 = vector.broadcast %cst_104 : f32 to vector<8x128xf32>
    %265 = arith.addf %264, %263 : vector<8x128xf32>
    %266 = arith.divf %264, %265 : vector<8x128xf32>
    %267 = vector.extract_strided_slice %248 {offsets = [0, 256], sizes = [8, 128], strides = [1, 1]} : vector<8x384xf32> to vector<8x128xf32>
    %268 = vector.extract_strided_slice %250 {offsets = [0, 256], sizes = [8, 128], strides = [1, 1]} : vector<8x384xf32> to vector<8x128xf32>
    %269 = arith.addf %268, %9 : vector<8x128xf32>
    %270 = arith.mulf %258, %269 : vector<8x128xf32>
    %271 = arith.addf %267, %270 : vector<8x128xf32>
    %272 = math.tanh %271 : vector<8x128xf32>
    %cst_105 = arith.constant 1.000000e+00 : f32
    %273 = vector.broadcast %cst_105 : f32 to vector<8x128xf32>
    %274 = arith.subf %273, %266 : vector<8x128xf32>
    %275 = arith.mulf %274, %272 : vector<8x128xf32>
    %276 = arith.mulf %266, %249 : vector<8x128xf32>
    %277 = arith.addf %275, %276 : vector<8x128xf32>
    %c0_106 = arith.constant 0 : index
    %c0_107 = arith.constant 0 : index
    %278 = vector.load %arg6[%c0_106, %c0_107] : memref<8x128xf32, #tpu.memory_space<vmem>>, vector<8x128xf32>
    tpu.vector_store %arg6[%c0_106, %c0_107], %277 {strides = array<i32>} : memref<8x128xf32, #tpu.memory_space<vmem>>, vector<8x128xf32>,
    %c0_108 = arith.constant 0 : index
    %279 = arith.index_cast %245 : i32 to index
    %c0_109 = arith.constant 0 : index
    %c0_110 = arith.constant 0 : index
    %280 = vector.load %arg5[%c0_108, %279, %c0_109, %c0_110] : memref<1x8x8x128xf32, #tpu.memory_space<vmem>>, vector<1x1x8x128xf32>
    %281 = vector.shape_cast %280 : vector<1x1x8x128xf32> to vector<8x128xf32>
    %282 = vector.shape_cast %277 : vector<8x128xf32> to vector<1x1x8x128xf32>
    tpu.vector_store %arg5[%c0_108, %279, %c0_109, %c0_110], %282 {strides = array<i32>} : memref<1x8x8x128xf32, #tpu.memory_space<vmem>>, vector<1x1x8x128xf32>,
    %c7_i32_111 = arith.constant 7 : i32
    %c7_i32_112 = arith.constant 7 : i32
    %283 = arith.subi %c7_i32_112, %c7_i32_111 : i32
    %284 = arith.select %0, %283, %c7_i32_111 : i32
    %c0_113 = arith.constant 0 : index
    %285 = arith.index_cast %284 : i32 to index
    %c0_114 = arith.constant 0 : index
    %c0_115 = arith.constant 0 : index
    %286 = vector.load %arg2[%c0_113, %285, %c0_114, %c0_115] : memref<1x8x8x384xf32, #tpu.memory_space<vmem>>, vector<1x1x8x384xf32>
    %287 = vector.shape_cast %286 : vector<1x1x8x384xf32> to vector<8x384xf32>
    %c0_116 = arith.constant 0 : index
    %c0_117 = arith.constant 0 : index
    %288 = vector.load %arg6[%c0_116, %c0_117] : memref<8x128xf32, #tpu.memory_space<vmem>>, vector<8x128xf32>
    %cst_118 = arith.constant dense<0.000000e+00> : vector<8x384xf32>
    %289 = tpu.matmul %288, %5, %cst_118 {dimension_numbers = #tpu.dot_dimension_numbers<[1], [0], [0], [1], [0, 0, 1, 1], [], []>} : vector<8x128xf32>, vector<128x384xf32>, vector<8x384xf32> -> vector<8x384xf32>
    %290 = vector.extract_strided_slice %287 {offsets = [0, 0], sizes = [8, 128], strides = [1, 1]} : vector<8x384xf32> to vector<8x128xf32>
    %291 = vector.extract_strided_slice %289 {offsets = [0, 0], sizes = [8, 128], strides = [1, 1]} : vector<8x384xf32> to vector<8x128xf32>
    %292 = arith.addf %290, %291 : vector<8x128xf32>
    %293 = arith.negf %292 : vector<8x128xf32>
    %294 = math.exp %293 : vector<8x128xf32>
    %cst_119 = arith.constant 1.000000e+00 : f32
    %295 = vector.broadcast %cst_119 : f32 to vector<8x128xf32>
    %296 = arith.addf %295, %294 : vector<8x128xf32>
    %297 = arith.divf %295, %296 : vector<8x128xf32>
    %298 = vector.extract_strided_slice %287 {offsets = [0, 128], sizes = [8, 128], strides = [1, 1]} : vector<8x384xf32> to vector<8x128xf32>
    %299 = vector.extract_strided_slice %289 {offsets = [0, 128], sizes = [8, 128], strides = [1, 1]} : vector<8x384xf32> to vector<8x128xf32>
    %300 = arith.addf %298, %299 : vector<8x128xf32>
    %301 = arith.negf %300 : vector<8x128xf32>
    %302 = math.exp %301 : vector<8x128xf32>
    %cst_120 = arith.constant 1.000000e+00 : f32
    %303 = vector.broadcast %cst_120 : f32 to vector<8x128xf32>
    %304 = arith.addf %303, %302 : vector<8x128xf32>
    %305 = arith.divf %303, %304 : vector<8x128xf32>
    %306 = vector.extract_strided_slice %287 {offsets = [0, 256], sizes = [8, 128], strides = [1, 1]} : vector<8x384xf32> to vector<8x128xf32>
    %307 = vector.extract_strided_slice %289 {offsets = [0, 256], sizes = [8, 128], strides = [1, 1]} : vector<8x384xf32> to vector<8x128xf32>
    %308 = arith.addf %307, %9 : vector<8x128xf32>
    %309 = arith.mulf %297, %308 : vector<8x128xf32>
    %310 = arith.addf %306, %309 : vector<8x128xf32>
    %311 = math.tanh %310 : vector<8x128xf32>
    %cst_121 = arith.constant 1.000000e+00 : f32
    %312 = vector.broadcast %cst_121 : f32 to vector<8x128xf32>
    %313 = arith.subf %312, %305 : vector<8x128xf32>
    %314 = arith.mulf %313, %311 : vector<8x128xf32>
    %315 = arith.mulf %305, %288 : vector<8x128xf32>
    %316 = arith.addf %314, %315 : vector<8x128xf32>
    %c0_122 = arith.constant 0 : index
    %c0_123 = arith.constant 0 : index
    %317 = vector.load %arg6[%c0_122, %c0_123] : memref<8x128xf32, #tpu.memory_space<vmem>>, vector<8x128xf32>
    tpu.vector_store %arg6[%c0_122, %c0_123], %316 {strides = array<i32>} : memref<8x128xf32, #tpu.memory_space<vmem>>, vector<8x128xf32>,
    %c0_124 = arith.constant 0 : index
    %318 = arith.index_cast %284 : i32 to index
    %c0_125 = arith.constant 0 : index
    %c0_126 = arith.constant 0 : index
    %319 = vector.load %arg5[%c0_124, %318, %c0_125, %c0_126] : memref<1x8x8x128xf32, #tpu.memory_space<vmem>>, vector<1x1x8x128xf32>
    %320 = vector.shape_cast %319 : vector<1x1x8x128xf32> to vector<8x128xf32>
    %321 = vector.shape_cast %316 : vector<8x128xf32> to vector<1x1x8x128xf32>
    tpu.vector_store %arg5[%c0_124, %318, %c0_125, %c0_126], %321 {strides = array<i32>} : memref<1x8x8x128xf32, #tpu.memory_space<vmem>>, vector<1x1x8x128xf32>,
    %c8_i32 = arith.constant 8 : i32
    return
  }
  func.func @transform_0(%arg0: i32, %arg1: i32) -> (i32, i32, i32, i32) {
    %c0_i32 = arith.constant 0 : i32
    %0 = arith.subi %c0_i32, %arg1 : i32
    %1 = arith.muli %arg0, %0 : i32
    %c1_i32 = arith.constant 1 : i32
    %2 = arith.subi %c1_i32, %arg0 : i32
    %3 = arith.muli %2, %arg1 : i32
    %4 = arith.addi %1, %3 : i32
    %c0_i32_0 = arith.constant 0 : i32
    %c0_i32_1 = arith.constant 0 : i32
    %c0_i32_2 = arith.constant 0 : i32
    return %arg0, %4, %c0_i32_0, %c0_i32_1 : i32, i32, i32, i32
  }
  func.func @transform_1(%arg0: i32, %arg1: i32) -> (i32, i32, i32) {
    %c0_i32 = arith.constant 0 : i32
    %c0_i32_0 = arith.constant 0 : i32
    %c0_i32_1 = arith.constant 0 : i32
    return %arg0, %c0_i32, %c0_i32_0 : i32, i32, i32
  }
  func.func @transform_2(%arg0: i32, %arg1: i32) -> (i32, i32, i32) {
    %c0_i32 = arith.constant 0 : i32
    %c0_i32_0 = arith.constant 0 : i32
    %c0_i32_1 = arith.constant 0 : i32
    return %arg0, %c0_i32, %c0_i32_0 : i32, i32, i32
  }
  func.func @transform_3(%arg0: i32, %arg1: i32) -> (i32, i32, i32, i32) {
    %c0_i32 = arith.constant 0 : i32
    %0 = arith.subi %c0_i32, %arg1 : i32
    %1 = arith.muli %arg0, %0 : i32
    %c1_i32 = arith.constant 1 : i32
    %2 = arith.subi %c1_i32, %arg0 : i32
    %3 = arith.muli %2, %arg1 : i32
    %4 = arith.addi %1, %3 : i32
    %c0_i32_0 = arith.constant 0 : i32
    %c0_i32_1 = arith.constant 0 : i32
    %c0_i32_2 = arith.constant 0 : i32
    return %arg0, %4, %c0_i32_0, %c0_i32_1 : i32, i32, i32, i32
  }
}

</mosaic_0001>

<bundles_post_ra>
// kernel: tpu_custom_call.1
= control target key start
LH: loop header
LB: loop body
LE: loop exit
PB: predicated region body
PF: predicated region fallthrough
CT: control target
= control target key end

     0   :  { %8 = vsyncpa [#allocation4], 0  ;;  %s3924_s0 = inlined_call_operand.hbm [shape: f32[2,8,8,384], index: 0, kind: input, shape index: {}]   ;;  %s3925_s1 = inlined_call_operand.hbm [shape: f32[2,128,384], index: 1, kind: input, shape index: {}]   ;;  %s3926_s2 = inlined_call_operand.vmem [shape: f32[2,1,128], index: 2, kind: input, shape index: {}]   ;;  %s3927_s3 = inlined_call_operand.hbm [shape: f32[2,8,8,128], index: 3, kind: output, shape index: {}]  }
   0x1   :  { %10 = vsyncpa [#allocation4 + $0x1], 0 }
   0x2   :  { %11 = vsyncpa [#allocation7], 0 }
   0x3   :  { %13 = vsyncpa [#allocation7 + $0x1], 0 }
   0x4   :  { %14 = vsyncpa [#allocation5], 0 }
   0x5   :  { %16 = vsyncpa [#allocation5 + $0x1], 0  ;;  %s3191_s12 = smov 0   ;;  %s3193_s13 = smov 0  }
   0x6   :  { %s3195_s14 = smov 0   ;;  %s3197_s15 = smov 0  }
   0x7   :  { %s3199_s16 = smov 0   ;;  %s3201_s17 = smov 0  }
   0x8 LB: > { %s1934_s18 = sadd.s32 4294967295, %s3159_s17   ;;  %s1935_s19 = sadd.s32 4294967294, %s3159_s17   ;;  %s3159_s17 = sphi %s3201_s17, %s22_s17   ;;  %s3155_s16 = sphi %s3199_s16, %s3945_s16   ;;  %s3151_s15 = sphi %s3197_s15, %s3944_s15   ;;  %s3147_s14 = sphi %s3195_s14, %s3943_s14   ;;  %s3143_s13 = sphi %s3193_s13, %s3942_s13   ;;  %s3139_s12 = sphi %s3191_s12, %s3941_s12  }
   0x9   : > { %s34_s20 = sadd.s32 1, %s3155_s16  ;;  %s53_s21 = sadd.s32 1, %s3147_s14 }
   0xa   : > { %p36_p0 = scmp.ge.s32.totalorder %s34_s20, 2  ;;  %p60_p1 = scmp.ne.s32.totalorder %s3147_s14, %s3143_s13 }
   0xb   : > { %p61_p2 = scmp.eq.s32.totalorder %s3159_s17, 0  ;;  %p66_p3 = scmp.ne.s32.totalorder %s3143_s13, %s3139_s12 }
   0xc   : > { %s3947_s20 = smov (%p36_p0, %s34_s20), 0  ;;  %p67_p5 = scmp.eq.s32.totalorder %s1934_s18, 0 }
   0xd   : > { %p3232_p4 = por %p61_p2, %p60_p1  ;;  %s48_s23 = ssub.s32 %s3155_s16, %s3947_s20 }
   0xe   : > { %p154_p6 = scmp.eq.s32.totalorder %s1934_s18, 1  ;;  %p51_p7 = scmp.eq.s32.totalorder %s48_s23, 0 }
   0xf   : > { %p3238_p8 = por %p67_p5, %p66_p3  ;;  %p160_p10 = scmp.eq.s32.totalorder %s1935_s19, 1 }
  0x10   : > { %p3242_p9 = por %p154_p6, %p60_p1  ;;  %p2876_p13 = scmp.lt.s32.totalorder %s3159_s17, 2 }
  0x11   : > { %s3931_s24 = scalar_select %p3238_p8, 1, 0 }
  0x12   : > { %s3932_s25 = scalar_select %p3242_p9, 1, 0 }
  0x13   : > { %s3247_s26 = scalar_select %p51_p7, %s3147_s14, %s53_s21  }
  0x14   : > { %p3249_p11 = por %p160_p10, %p66_p3  ;;  %s3256_s28 = sand.u32 1, %s3147_s14  }
  0x15   : > { %s2853_s29 = smul.u32 192, %s3256_s28  ;;  %p3262_p0 = pnand %p2876_p13, %p3232_p4 }
  0x16   : > { %s3933_s27 = scalar_select %p3249_p11, 1, 0 }
  0x17   : > { %s2854_s30 = smul.u32 3072, %s3155_s16  ;;  %s184_s8 = scalar_lea.vmem [#allocation3], %s2853_s29 }
  0x18   : > { %s199_s9 = sshll.u32 %s184_s8, 4  ;;  %s181_s10 = scalar_lea.sflag [#allocation4], %s3256_s28  ;;  %s3271_s9 = int_to_ptr.vmem [resolvable:$true] %s199_s9 }
  0x19   : > { %s3269_s7 = scalar_lea.hbm %s3924_s0, %s2854_s30  ;;  %p3015_p3 = pneg %p3262_p0 }
  0x1a   : > { %s3013_s11 = scalar_lea.hbm %s3269_s7, 3072  ;;  %s3018_s21 = scalar_lea.hbm %s3924_s0, 6144 }
  0x1b   : > { %p3014_p2 = scmp.ne.s32.totalorder %s3269_s7, %s3013_s11  ;;  %p3019_p6 = scmp.lt.u32.totalorder %s3269_s7, %s3924_s0 }
  0x1c   : > { %p3020_p7 = scmp.lt.u32.totalorder %s3018_s21, %s3013_s11  ;;  %p3022_p13 = scmp.lt.u32.totalorder %s3013_s11, %s3269_s7 }
  0x1d   : > { %p3016_p4 = pnand %p3015_p3, %p3014_p2 }
  0x1e   : > { %p3021_p10 = por %p3020_p7, %p3019_p6 }
  0x1f   : > { %p3017_p5 = pneg %p3016_p4 }
  0x20   : > { %p3023_p12 = por %p3022_p13, %p3021_p10 }
  0x22   : > { %p3024_p1 = pnand %p3023_p12, %p3017_p5 }
  0x24   : > { %3027 = shalt.err (!%p3024_p1)
}
  0x25   : > { %s3028_s29 = scalar_lea.vmem %s3271_s9, 3072  ;;  %s3161_s30 = smov [#allocation3]  }
  0x26   : > { %p3029_p2 = scmp.ne.s32.totalorder %s3271_s9, %s3028_s29  ;;  %s3033_s5 = sshll.u32 %s3161_s30, 4  ;;  %s3034_s5 = int_to_ptr.vmem [resolvable:$false] %s3033_s5 }
  0x27   : > { %s3035_s6 = scalar_lea.vmem %s3034_s5, 6144  ;;  %p3036_p9 = scmp.lt.s32.totalorder %s3271_s9, %s3034_s5 }
  0x28   : > { %p3031_p4 = pnand %p3029_p2, %p3015_p3  ;;  %p3037_p6 = scmp.lt.s32.totalorder %s3035_s6, %s3028_s29 }
  0x2a   : > { %p3032_p11 = pneg %p3031_p4  ;;  %p3038_p7 = por %p3037_p6, %p3036_p9 }
  0x2c   : > { %p3039_p10 = pnand %p3038_p7, %p3032_p11 }
  0x2e   : > { %3042 = shalt.err (!%p3039_p10)
}
  0x2f   : > { %s3162_s8 = smov 384   ;;  %s3163_s11 = smov 24  }
  0x30   : > { %2868 = dma.hbm_to_vmem [thread:$0]  (!%p3262_p0), %s3269_s7, 3072, %s3271_s9, %s181_s10, %s3162_s8, %s3162_s8, %s3163_s11  }
  0x31   : > { %p234_p9 = scmp.lt.s32.totalorder %s3159_s17, 3  ;;  %s2855_s18 = smul.u32 384, %s3256_s28 }
  0x32   : > { %p3935_p11 = scmp.ge.s32.totalorder %s3159_s17, 1  ;;  %s2856_s21 = smul.u32 6144, %s3155_s16 }
  0x33   : > { %s213_s30 = scalar_lea.vmem [#allocation6], %s2855_s18  ;;  %s210_s7 = scalar_lea.sflag [#allocation7], %s3256_s28 }
  0x34   : > { %p3309_p12 = pnand %p3935_p11, %p234_p9  ;;  %s3317_s29 = scalar_lea.hbm %s3925_s1, %s2856_s21 }
  0x35   : > { %s220_s5 = sshll.u32 %s213_s30, 4  ;;  %s3043_s9 = scalar_lea.hbm %s3317_s29, 6144  ;;  %s3319_s5 = int_to_ptr.vmem [resolvable:$true] %s220_s5 }
  0x36   : > { %p3044_p1 = scmp.ne.s32.totalorder %s3317_s29, %s3043_s9  ;;  %s3048_s21 = scalar_lea.hbm %s3925_s1, 12288 }
  0x37   : > { %p3049_p2 = scmp.lt.u32.totalorder %s3317_s29, %s3925_s1  ;;  %p3050_p4 = scmp.lt.u32.totalorder %s3048_s21, %s3043_s9 }
  0x38   : > { %p3046_p5 = pnand %p3044_p1, %p3015_p3  ;;  %p3052_p7 = scmp.lt.u32.totalorder %s3043_s9, %s3317_s29 }
  0x39   : > { %p3051_p6 = por %p3050_p4, %p3049_p2 }
  0x3a   : > { %p3047_p13 = pneg %p3046_p5 }
  0x3b   : > { %p3053_p10 = por %p3052_p7, %p3051_p6 }
  0x3d   : > { %p3054_p9 = pnand %p3053_p10, %p3047_p13 }
  0x3f   : > { %3057 = shalt.err (!%p3054_p9)
}
  0x40   : > { %s3058_s18 = scalar_lea.vmem %s3319_s5, 6144  ;;  %s3164_s30 = smov [#allocation6]  }
  0x41   : > { %p3059_p11 = scmp.ne.s32.totalorder %s3319_s5, %s3058_s18  ;;  %s3063_s10 = sshll.u32 %s3164_s30, 4  ;;  %s3064_s10 = int_to_ptr.vmem [resolvable:$false] %s3063_s10 }
  0x42   : > { %s3065_s6 = scalar_lea.vmem %s3064_s10, 12288  ;;  %p3066_p8 = scmp.lt.s32.totalorder %s3319_s5, %s3064_s10 }
  0x43   : > { %p3061_p1 = pnand %p3059_p11, %p3015_p3  ;;  %p3067_p2 = scmp.lt.s32.totalorder %s3065_s6, %s3058_s18 }
  0x45   : > { %p3062_p5 = pneg %p3061_p1  ;;  %p3068_p4 = por %p3067_p2, %p3066_p8 }
  0x47   : > { %p3069_p6 = pnand %p3068_p4, %p3062_p5 }
  0x49   : > { %3072 = shalt.err (!%p3069_p6)
}
  0x4a   : > { %2871 = dma.hbm_to_vmem [thread:$0]  (!%p3262_p0), %s3317_s29, 6144, %s3319_s5, %s210_s7, %s3162_s8, %s3162_s8, %s3163_s11  }
  0x4b   : > { %238 = sbr.rel (%p3309_p12) target bundleno = 2209 (0x8a1), region = 32  ;;  %s3353_s9 = sand.u32 (!%p3309_p12), 1, %s3143_s13  }
  0x4c   : > { %s2857_s21 = smul.u32 (!%p3309_p12), 192, %s3353_s9  ;;  %s241_s22 = scalar_lea.sflag (!%p3309_p12), [#allocation4], %s3353_s9 }
  0x4d   : > { %p3937_p8 = scmp.ne.s32.totalorder (!%p3309_p12), %s3931_s24, 0 }
  0x4e   : > { %s3357_s4 = scalar_lea.vmem (!%p3309_p12), [#allocation3], %s2857_s21 }
  0x52   : > { %3126 = dma.done.wait (%p3937_p8), %s241_s22, 3072  }
  0x53   : > { %3128 = vsyncadd (%p3937_p8), %s241_s22, 4294964224  ;;  %s2858_s28 = smul.u32 384, %s3353_s9  ;;  %s250_s8 = scalar_lea.sflag [#allocation7], %s3353_s9 }
  0x55   : > { %s3365_s11 = scalar_lea.vmem [#allocation6], %s2858_s28 }
  0x56   : > { %3130 = dma.done.wait (%p3937_p8), %s250_s8, 6144  }
  0x57   : > { %3132 = vsyncadd (%p3937_p8), %s250_s8, 4294961152  ;;  %v3165_v0 = vmov 0.0|0.0   ;;  %v3166_v1 = vmov 0.0   ;;  %vm3167_vm0 = vmmov 0   ;;  %v306_v2 = vld [vmem:[%s3365_s11 + $0x8] sm:$0xff]  ;;  %v309_v3 = vld [vmem:[%s3365_s11 + $0x20] sm:$0xff] }
  0x58   : > { %2437 = vmatprep.subr.bf16.mxu1 %v3165_v0  ;;  %432 = vmatprep.mubr.f32.mxu0 %v3166_v1  ;;  %v305_v4 = vld [vmem:[%s3365_s11] sm:$0xff]  ;;  %v3378_v5 = vpack.c.bf16 %v309_v3, %v306_v2  ;;  %v308_v6 = vld [vmem:[%s3365_s11 + $0x18] sm:$0xff]  ;;  %v315_v8 = vld [vmem:[%s3365_s11 + $0x50] sm:$0xff]  ;;  %p299_p0 = scmp.eq.s32.totalorder %s3151_s15, 1  ;;  %p290_p3 = scmp.lt.s32.totalorder %s3151_s15, 1 }
  0x59   : > { %2157 = vmatprep.mubr.msk.f32.mxu1 %vm3167_vm0, %v3166_v1  ;;  %v312_v7 = vld [vmem:[%s3365_s11 + $0x38] sm:$0xff]  ;;  %v3383_v9 = vpack.c.bf16 %v308_v6, %v305_v4  ;;  %v311_v11 = vld [vmem:[%s3365_s11 + $0x30] sm:$0xff]  ;;  %v314_v12 = vld [vmem:[%s3365_s11 + $0x48] sm:$0xff]  ;;  %s1941_s30 = sshll.u32 %s3353_s9, 6  ;;  %p3938_p13 = scmp.ne.s32.totalorder %s3932_s25, 0 }
  0x5a   : > { %v3385_v10 = vpack.c.bf16 %v315_v8, %v312_v7  ;;  %v318_v13 = vld [vmem:[%s3365_s11 + $0x68] sm:$0xff]  ;;  %2406 = vmatprep.subr.bf16.mxu0 %v3378_v5  ;;  %v321_v14 = vld [vmem:[%s3365_s11 + $0x80] sm:$0xff]  ;;  %v3393_v15 = vpack.c.bf16 %v314_v12, %v311_v11  ;;  %v320_v18 = vld [vmem:[%s3365_s11 + $0x78] sm:$0xff]  ;;  %s3544_s24 = scalar_select %p299_p0, 7, 0 }
  0x5b   : > { %2408 = vmatpush1.bf16.msra.mxu0 %v3383_v9  ;;  %v3396_v16 = vpack.c.bf16 %v321_v14, %v318_v13  ;;  %v317_v17 = vld [vmem:[%s3365_s11 + $0x60] sm:$0xff]  ;;  %v324_v19 = vld [vmem:[%s3365_s11 + $0x98] sm:$0xff]  ;;  %v327_v20 = vld [vmem:[%s3365_s11 + $0xb0] sm:$0xff]  ;;  %s291_s5 = scalar_select %p290_p3, %s3151_s15, 1 }
  0x5c   : > { %2410 = vmatprep.subr.bf16.mxu0 %v3385_v10  ;;  %v3403_v21 = vpack.c.bf16 %v320_v18, %v317_v17  ;;  %v323_v22 = vld [vmem:[%s3365_s11 + $0x90] sm:$0xff]  ;;  %v3407_v23 = vpack.c.bf16 %v327_v20, %v324_v19  ;;  %v326_v24 = vld [vmem:[%s3365_s11 + $0xa8] sm:$0xff]  ;;  %v333_v28 = vld [vmem:[%s3365_s11 + $0xe0] sm:$0xff]  ;;  %s1980_s19 = smul.u32 24, %s3544_s24  ;;  %s1946_s10 = sshll.u32 %s3544_s24, 3 }
  0x5d   : > { %v307_v25 = vld [vmem:[%s3365_s11 + $0x10] sm:$0xff]  ;;  %v310_v26 = vld [vmem:[%s3365_s11 + $0x28] sm:$0xff]  ;;  %v313_v30 = vld [vmem:[%s3365_s11 + $0x40] sm:$0xff]  ;;  %v3419_v32 = vpack.c.bf16 %v326_v24, %v323_v22  ;;  %s292_s18 = scalar_lea.vmem %s3926_s2, %s291_s5  ;;  %s3558_s6 = scalar_lea.vmem [#allocation8], %s1941_s30 }
  0x5e   : > { %v330_v27 = vld [vmem:[%s3365_s11 + $0xc8] sm:$0xff]  ;;  %v3414_v29 = vpack.c.bf16 %v310_v26, %v307_v25  ;;  %v316_v31 = vld [vmem:[%s3365_s11 + $0x58] sm:$0xff]  ;;  %v329_v33 = vld [vmem:[%s3365_s11 + $0xc0] sm:$0xff]  ;;  %s363_s29 = scalar_lea.vmem %s3357_s4, %s1980_s19 [#allocation3]  ;;  %s533_s21 = scalar_lea.vmem %s3558_s6, %s1946_s10 [#allocation8] }
  0x5f   : > { %2412 = vmatpush1.bf16.msra.mxu0 %v3393_v15  ;;  %v3423_v34 = vpack.c.bf16 %v316_v31, %v313_v30  ;;  %v3426_v35 = vpack.c.bf16 %v333_v28, %v330_v27  ;;  %v332_v36 = vld [vmem:[%s3365_s11 + $0xd8] sm:$0xff]  ;;  %v319_v37 = vld [vmem:[%s3365_s11 + $0x70] sm:$0xff]  ;;  %v322_v38 = vld [vmem:[%s3365_s11 + $0x88] sm:$0xff]  ;;  %s3603_s22 = scalar_select %p299_p0, 6, 1 }
  0x60   : > { %2414 = vmatprep.subr.bf16.mxu0 %v3396_v16  ;;  %2439 = vmatpush3.bf16.msra.mxu1 %v3414_v29  ;;  %v336_v39 = vld [vmem:[%s3365_s11 + $0xf8] sm:$0xff]  ;;  %v339_v40 = vld [vmem:[%s3365_s11 + $0x110] sm:$0xff]  ;;  %v3435_v41 = vpack.c.bf16 %v332_v36, %v329_v33  ;;  %v3439_v43 = vpack.c.bf16 %v322_v38, %v319_v37  ;;  %v338_v45 = vld [vmem:[%s3365_s11 + $0x108] sm:$0xff]  ;;  %s3653_s19 = scalar_select %p299_p0, 5, 2 }
  0x61   : > { %2440 = vmatprep.subr.bf16.mxu1 %v3165_v0  ;;  %v335_v42 = vld [vmem:[%s3365_s11 + $0xf0] sm:$0xff]  ;;  %v3442_v44 = vpack.c.bf16 %v339_v40, %v336_v39  ;;  %v325_v46 = vld [vmem:[%s3365_s11 + $0xa0] sm:$0xff]  ;;  %v328_v47 = vld [vmem:[%s3365_s11 + $0xb8] sm:$0xff]  ;;  %s1981_s28 = smul.u32 24, %s3603_s22 }
  0x62   : > { %v342_v48 = vld [vmem:[%s3365_s11 + $0x128] sm:$0xff]  ;;  %v345_v49 = vld [vmem:[%s3365_s11 + $0x140] sm:$0xff]  ;;  %v3451_v50 = vpack.c.bf16 %v338_v45, %v335_v42  ;;  %v3455_v52 = vpack.c.bf16 %v328_v47, %v325_v46  ;;  %v344_v54 = vld [vmem:[%s3365_s11 + $0x138] sm:$0xff]  ;;  %s1954_s7 = sshll.u32 %s3653_s19, 3 }
  0x63   : > { %2416 = vmatpush1.bf16.msra.mxu0 %v3403_v21  ;;  %v341_v51 = vld [vmem:[%s3365_s11 + $0x120] sm:$0xff]  ;;  %v3458_v53 = vpack.c.bf16 %v345_v49, %v342_v48  ;;  %v331_v55 = vld [vmem:[%s3365_s11 + $0xd0] sm:$0xff]  ;;  %v334_v56 = vld [vmem:[%s3365_s11 + $0xe8] sm:$0xff]  ;;  %s538_s8 = scalar_lea.vmem %s3357_s4, %s1981_s28 [#allocation3]  ;;  %s883_s23 = scalar_lea.vmem %s3558_s6, %s1954_s7 [#allocation8] }
  0x64   : > { %2418 = vmatprep.subr.bf16.mxu0 %v3407_v23  ;;  %2442 = vmatpush3.bf16.msra.mxu1 %v3423_v34  ;;  %v348_v57 = vld [vmem:[%s3365_s11 + $0x158] sm:$0xff]  ;;  %v351_v58 = vld [vmem:[%s3365_s11 + $0x170] sm:$0xff]  ;;  %v3467_v59 = vpack.c.bf16 %v344_v54, %v341_v51  ;;  %v3471_v61 = vpack.c.bf16 %v334_v56, %v331_v55  ;;  %v350_v63 = vld [vmem:[%s3365_s11 + $0x168] sm:$0xff]  ;;  %s3753_s28 = scalar_select %p299_p0, 3, 4 }
  0x65   : > { %2443 = vmatprep.subr.bf16.mxu1 %v3165_v0  ;;  %v347_v60 = vld [vmem:[%s3365_s11 + $0x150] sm:$0xff]  ;;  %v3474_v62 = vpack.c.bf16 %v351_v58, %v348_v57  ;;  %v337_v2 = vld [vmem:[%s3365_s11 + $0x100] sm:$0xff]  ;;  %v340_v3 = vld [vmem:[%s3365_s11 + $0x118] sm:$0xff] }
  0x66   : > { %v3481_v4 = vpack.c.bf16 %v350_v63, %v347_v60  ;;  %v3484_v6 = vpack.c.bf16 %v340_v3, %v337_v2  ;;  %v343_v7 = vld [vmem:[%s3365_s11 + $0x130] sm:$0xff]  ;;  %v346_v8 = vld [vmem:[%s3365_s11 + $0x148] sm:$0xff]  ;;  %v349_v12 = vld [vmem:[%s3365_s11 + $0x160] sm:$0xff] }
  0x67   : > { %2420 = vmatpush1.bf16.msra.mxu0 %v3419_v32  ;;  %v3492_v11 = vpack.c.bf16 %v346_v8, %v343_v7  ;;  %v352_v13 = vld [vmem:[%s3365_s11 + $0x178] sm:$0xff]  ;;  %v364_v17 = vld [vmem:[%s363_s29] sm:$0xff]  ;;  %v365_v20 = vld [vmem:[%s363_s29 + $0x8] sm:$0xff]  ;;  %s1950_s11 = sshll.u32 %s3603_s22, 3 }
  0x68   : > { %2422 = vmatprep.subr.bf16.mxu0 %v3426_v35  ;;  %2445 = vmatpush3.bf16.msra.mxu1 %v3439_v43  ;;  %v3500_v14 = vpack.c.bf16 %v352_v13, %v349_v12  ;;  %v3553_v36 = vld [vmem:[%s292_s18] ss:$0 sm:$0xff]  ;;  %v366_v40 = vld [vmem:[%s363_s29 + $0x10] sm:$0xff]  ;;  %v540_v60 = vld [vmem:[%s538_s8 + $0x8] sm:$0xff]  ;;  %s708_s24 = scalar_lea.vmem %s3558_s6, %s1950_s11 [#allocation8]  ;;  %s1982_s29 = smul.u32 24, %s3653_s19 }
  0x69   : > { %2446 = vmatprep.subr.bf16.mxu1 %v3165_v0  ;;  %v539_v55 = vld [vmem:[%s538_s8] sm:$0xff]  ;;  %s3703_s18 = scalar_select %p299_p0, 4, 3 }
  0x6a   : > { %s713_s5 = scalar_lea.vmem %s3357_s4, %s1982_s29 [#allocation3] }
  0x6b   : > { %2424 = vmatpush1.bf16.msra.mxu0 %v3435_v41  ;;  %s1983_s30 = smul.u32 24, %s3703_s18 }
  0x6c   : > { %2426 = vmatprep.subr.bf16.mxu0 %v3442_v44  ;;  %2448 = vmatpush3.bf16.msra.mxu1 %v3455_v52  ;;  %s3803_s29 = scalar_select %p299_p0, 2, 5 }
  0x6d   : > { %2449 = vmatprep.subr.bf16.mxu1 %v3165_v0  ;;  %s888_s10 = scalar_lea.vmem %s3357_s4, %s1983_s30 [#allocation3] }
  0x6e   : > { %s3851_s30 = scalar_select %p299_p0, 1, 6 }
  0x6f   : > { %2428 = vmatpush1.bf16.msra.mxu0 %v3451_v50 }
  0x70   : > { %2430 = vmatprep.subr.bf16.mxu0 %v3458_v53  ;;  %2451 = vmatpush3.bf16.msra.mxu1 %v3471_v61 }
  0x71   : > { %2452 = vmatprep.subr.bf16.mxu1 %v3165_v0 }
  0x73   : > { %2432 = vmatpush1.bf16.msra.mxu0 %v3467_v59 }
  0x74   : > { %2434 = vmatprep.subr.bf16.mxu0 %v3474_v62  ;;  %2454 = vmatpush3.bf16.msra.mxu1 %v3484_v6 }
  0x75   : > { %2455 = vmatprep.subr.bf16.mxu1 %v3165_v0 }
  0x77   : > { %2436 = vmatpush1.bf16.msra.mxu0 %v3481_v4 }
  0x78   : > { %2462 = vmatprep.subr.bf16.mxu0 %v3378_v5  ;;  %2457 = vmatpush3.bf16.msra.mxu1 %v3492_v11 }
  0x79   : > { %2458 = vmatprep.subr.bf16.mxu1 %v3165_v0 }
  0x7a   : > { %433 = vmatmul.mubr.f32.vlgmr.msra.gmra.mrb[0].mxu0 %v3166_v1 }
  0x7b   : > { %2464 = vmatpush1.bf16.msra.mxu0 %v3383_v9  ;;  %607 = vmatprep.mubr.f32.mxu0 %v3166_v1 }
  0x7c   : > { %2466 = vmatprep.subr.bf16.mxu0 %v3385_v10  ;;  %2460 = vmatpush3.bf16.msra.mxu1 %v3500_v14 }
  0x7d   : > { %2493 = vmatprep.subr.bf16.mxu1 %v3165_v0 }
  0x7f   : > { %2468 = vmatpush1.bf16.msra.mxu0 %v3393_v15  ;;  %2158 = vmatmul.mubr.f32.vlgmr.msra.gmra.mrb[0].mxu1 %v3166_v1 }
  0x80   : > { %2470 = vmatprep.subr.bf16.mxu0 %v3396_v16  ;;  %2495 = vmatpush3.bf16.msra.mxu1 %v3414_v29 }
  0x81   : > { %2496 = vmatprep.subr.bf16.mxu1 %v3165_v0  ;;  %2192 = vmatprep.mubr.msk.f32.mxu1 %vm3167_vm0, %v3166_v1 }
  0x83   : > { %2472 = vmatpush1.bf16.msra.mxu0 %v3403_v21 }
  0x84   : > { %2474 = vmatprep.subr.bf16.mxu0 %v3407_v23  ;;  %2498 = vmatpush3.bf16.msra.mxu1 %v3423_v34 }
  0x85   : > { %2499 = vmatprep.subr.bf16.mxu1 %v3165_v0 }
  0x87   : > { %2476 = vmatpush1.bf16.msra.mxu0 %v3419_v32 }
  0x88   : > { %2478 = vmatprep.subr.bf16.mxu0 %v3426_v35  ;;  %2501 = vmatpush3.bf16.msra.mxu1 %v3439_v43 }
  0x89   : > { %2502 = vmatprep.subr.bf16.mxu1 %v3165_v0 }
  0x8b   : > { %2480 = vmatpush1.bf16.msra.mxu0 %v3435_v41 }
  0x8c   : > { %2482 = vmatprep.subr.bf16.mxu0 %v3442_v44  ;;  %2504 = vmatpush3.bf16.msra.mxu1 %v3455_v52 }
  0x8d   : > { %2505 = vmatprep.subr.bf16.mxu1 %v3165_v0 }
  0x8f   : > { %2484 = vmatpush1.bf16.msra.mxu0 %v3451_v50 }
  0x90   : > { %2486 = vmatprep.subr.bf16.mxu0 %v3458_v53  ;;  %2507 = vmatpush3.bf16.msra.mxu1 %v3471_v61 }
  0x91   : > { %2508 = vmatprep.subr.bf16.mxu1 %v3165_v0 }
  0x93   : > { %2488 = vmatpush1.bf16.msra.mxu0 %v3467_v59 }
  0x94   : > { %2490 = vmatprep.subr.bf16.mxu0 %v3474_v62  ;;  %2510 = vmatpush3.bf16.msra.mxu1 %v3484_v6 }
  0x95   : > { %2511 = vmatprep.subr.bf16.mxu1 %v3165_v0 }
  0x97   : > { %2492 = vmatpush1.bf16.msra.mxu0 %v3481_v4 }
  0x98   : > { %2518 = vmatprep.subr.bf16.mxu0 %v3378_v5  ;;  %2513 = vmatpush3.bf16.msra.mxu1 %v3492_v11 }
  0x99   : > { %2514 = vmatprep.subr.bf16.mxu1 %v3165_v0 }
  0x9c   : > { %2516 = vmatpush3.bf16.msra.mxu1 %v3500_v14 }
  0x9d   : > { %2549 = vmatprep.subr.bf16.mxu1 %v3165_v0 }
 0x14d   : > { %v434_v18 = vpop.f32.mrb[0].mxu0 }
 0x14e   : > { %v509_v19 = vadd.f32 %v434_v18, %v364_v17  ;;  %v436_v22 = vpop.f32.mrb[1].mxu0 }
 0x14f   : > { %v516_v25 = vadd.f32 %v436_v22, %v365_v20  ;;  %v541_v22 = vld [vmem:[%s538_s8 + $0x10] sm:$0xff]  ;;  %s1984_s8 = smul.u32 24, %s3753_s28 }
 0x150   : > { %v1944_v24 = vmul.f32 -1.442695, %v509_v19 }
 0x151   : > { %v1945_v26 = vmul.f32 -1.442695, %v516_v25  ;;  %s1063_s11 = scalar_lea.vmem %s3357_s4, %s1984_s8 [#allocation3] }
 0x152   : > { %2933 = vpow2.f32 %v1944_v24  ;;  %v505_v27 = vpop.f32.mrb[0].mxu1  ;;  %s3861_s8 = scalar_select %p299_p0, 0, 7 }
 0x153   : > { %v2159_v28 = vpop.f32.mrb[1].mxu1  ;;  %2935 = vpow2.f32 %v1945_v26  ;;  %v523_v38 = vadd.f32 %v3553_v36, %v505_v27 }
 0x15c   : > { %v2934_v30 = vpop.eup %2933 }
 0x15d   : > { %v513_v31 = vadd.f32 1.0, %v2934_v30  ;;  %v2936_v33 = vpop.eup %2935 }
 0x15e   : > { %v520_v37 = vadd.f32 1.0, %v2936_v33 }
 0x15f   : > { %2937 = vrcp.f32 %v513_v31 }
 0x160   : > { %2939 = vrcp.f32 %v520_v37  ;;  %v714_v37 = vld [vmem:[%s713_s5] sm:$0xff] }
 0x169   : > { %v2938_v39 = vpop.eup %2937 }
 0x16a   : > { %v524_v42 = vmul.f32 %v2938_v39, %v523_v38  ;;  %v2940_v46 = vpop.eup %2939 }
 0x16b   : > { %v527_v47 = vsub.f32 1.0, %v2940_v46  ;;  %v529_v51 = vmul.f32 0.0, %v2940_v46 }
 0x16c   : > { %v525_v45 = vadd.f32 %v524_v42, %v366_v40  ;;  %v715_v42 = vld [vmem:[%s713_s5 + $0x8] sm:$0xff] }
 0x16e   : > { %2941 = vtanh.f32 %v525_v45 }
 0x178   : > { %v2942_v48 = vpop.eup %2941 }
 0x179   : > { %v528_v49 = vmul.f32 %v2942_v48, %v527_v47 }
 0x17b   : > { %v3561_v54 = vadd.f32 %v529_v51, %v528_v49 }
 0x17d   : > { %534 = vst [vmem:[%s533_s21] sm:$0xff] %v3561_v54  ;;  %608 = vmatmul.mubr.f32.vlgmr.msra.gmra.mrb[2].mxu0 %v3561_v54  ;;  %2193 = vmatmul.mubr.f32.vlgmr.msra.gmra.mrb[2].mxu1 %v3561_v54  ;;  %s1958_s21 = sshll.u32 %s3703_s18, 3 }
 0x17e   : > { %2520 = vmatpush1.bf16.msra.mxu0 %v3383_v9  ;;  %2551 = vmatpush3.bf16.msra.mxu1 %v3414_v29  ;;  %s1058_s22 = scalar_lea.vmem %s3558_s6, %s1958_s21 [#allocation8] }
 0x17f   : > { %2522 = vmatprep.subr.bf16.mxu0 %v3385_v10  ;;  %2552 = vmatprep.subr.bf16.mxu1 %v3165_v0 }
 0x180   : > { %782 = vmatprep.mubr.f32.mxu0 %v3166_v1  ;;  %2227 = vmatprep.mubr.msk.f32.mxu1 %vm3167_vm0, %v3166_v1 }
 0x182   : > { %2524 = vmatpush1.bf16.msra.mxu0 %v3393_v15  ;;  %2554 = vmatpush3.bf16.msra.mxu1 %v3423_v34 }
 0x183   : > { %2526 = vmatprep.subr.bf16.mxu0 %v3396_v16  ;;  %2555 = vmatprep.subr.bf16.mxu1 %v3165_v0 }
 0x186   : > { %2528 = vmatpush1.bf16.msra.mxu0 %v3403_v21  ;;  %2557 = vmatpush3.bf16.msra.mxu1 %v3439_v43 }
 0x187   : > { %2530 = vmatprep.subr.bf16.mxu0 %v3407_v23  ;;  %2558 = vmatprep.subr.bf16.mxu1 %v3165_v0 }
 0x18a   : > { %2532 = vmatpush1.bf16.msra.mxu0 %v3419_v32  ;;  %2560 = vmatpush3.bf16.msra.mxu1 %v3455_v52 }
 0x18b   : > { %2534 = vmatprep.subr.bf16.mxu0 %v3426_v35  ;;  %2561 = vmatprep.subr.bf16.mxu1 %v3165_v0 }
 0x18e   : > { %2536 = vmatpush1.bf16.msra.mxu0 %v3435_v41  ;;  %2563 = vmatpush3.bf16.msra.mxu1 %v3471_v61 }
 0x18f   : > { %2538 = vmatprep.subr.bf16.mxu0 %v3442_v44  ;;  %2564 = vmatprep.subr.bf16.mxu1 %v3165_v0 }
 0x192   : > { %2540 = vmatpush1.bf16.msra.mxu0 %v3451_v50  ;;  %2566 = vmatpush3.bf16.msra.mxu1 %v3484_v6 }
 0x193   : > { %2542 = vmatprep.subr.bf16.mxu0 %v3458_v53  ;;  %2567 = vmatprep.subr.bf16.mxu1 %v3165_v0 }
 0x196   : > { %2544 = vmatpush1.bf16.msra.mxu0 %v3467_v59  ;;  %2569 = vmatpush3.bf16.msra.mxu1 %v3492_v11 }
 0x197   : > { %2546 = vmatprep.subr.bf16.mxu0 %v3474_v62  ;;  %2570 = vmatprep.subr.bf16.mxu1 %v3165_v0 }
 0x19a   : > { %2548 = vmatpush1.bf16.msra.mxu0 %v3481_v4  ;;  %2572 = vmatpush3.bf16.msra.mxu1 %v3500_v14 }
 0x19b   : > { %2574 = vmatprep.subr.bf16.mxu0 %v3378_v5  ;;  %2605 = vmatprep.subr.bf16.mxu1 %v3165_v0 }
 0x250   : > { %v609_v56 = vpop.f32.mrb[2].mxu0  ;;  %v680_v57 = vpop.f32.mrb[2].mxu1 }
 0x251   : > { %v684_v58 = vadd.f32 %v609_v56, %v539_v55  ;;  %v611_v63 = vpop.f32.mrb[3].mxu0  ;;  %v2194_v2 = vpop.f32.mrb[3].mxu1  ;;  %v698_v19 = vadd.f32 %v3553_v36, %v680_v57 }
 0x252   : > { %v691_v7 = vadd.f32 %v611_v63, %v540_v60  ;;  %v716_v60 = vld [vmem:[%s713_s5 + $0x10] sm:$0xff]  ;;  %s1985_s5 = smul.u32 24, %s3803_s29 }
 0x253   : > { %v1948_v3 = vmul.f32 -1.442695, %v684_v58 }
 0x254   : > { %v1949_v8 = vmul.f32 -1.442695, %v691_v7  ;;  %s1238_s7 = scalar_lea.vmem %s3357_s4, %s1985_s5 [#allocation3] }
 0x255   : > { %2943 = vpow2.f32 %v1948_v3 }
 0x256   : > { %2945 = vpow2.f32 %v1949_v8 }
 0x25f   : > { %v2944_v12 = vpop.eup %2943 }
 0x260   : > { %v688_v13 = vadd.f32 1.0, %v2944_v12  ;;  %v2946_v17 = vpop.eup %2945 }
 0x261   : > { %v695_v18 = vadd.f32 1.0, %v2946_v17 }
 0x262   : > { %2947 = vrcp.f32 %v688_v13 }
 0x263   : > { %2949 = vrcp.f32 %v695_v18  ;;  %v889_v18 = vld [vmem:[%s888_s10] sm:$0xff] }
 0x26c   : > { %v2948_v20 = vpop.eup %2947 }
 0x26d   : > { %v699_v24 = vmul.f32 %v2948_v20, %v698_v19  ;;  %v2950_v26 = vpop.eup %2949 }
 0x26e   : > { %v702_v27 = vsub.f32 1.0, %v2950_v26  ;;  %v704_v31 = vmul.f32 %v2950_v26, %v3561_v54 }
 0x26f   : > { %v700_v25 = vadd.f32 %v699_v24, %v541_v22  ;;  %v890_v24 = vld [vmem:[%s888_s10 + $0x8] sm:$0xff] }
 0x271   : > { %2951 = vtanh.f32 %v700_v25 }
 0x27b   : > { %v2952_v28 = vpop.eup %2951 }
 0x27c   : > { %v703_v30 = vmul.f32 %v2952_v28, %v702_v27 }
 0x27e   : > { %v3611_v33 = vadd.f32 %v704_v31, %v703_v30 }
 0x280   : > { %709 = vst [vmem:[%s708_s24] sm:$0xff] %v3611_v33  ;;  %783 = vmatmul.mubr.f32.vlgmr.msra.gmra.mrb[4].mxu0 %v3611_v33  ;;  %2228 = vmatmul.mubr.f32.vlgmr.msra.gmra.mrb[4].mxu1 %v3611_v33  ;;  %s1962_s24 = sshll.u32 %s3753_s28, 3 }
 0x281   : > { %2576 = vmatpush1.bf16.msra.mxu0 %v3383_v9  ;;  %2607 = vmatpush3.bf16.msra.mxu1 %v3414_v29  ;;  %s1233_s19 = scalar_lea.vmem %s3558_s6, %s1962_s24 [#allocation8] }
 0x282   : > { %2578 = vmatprep.subr.bf16.mxu0 %v3385_v10  ;;  %2608 = vmatprep.subr.bf16.mxu1 %v3165_v0 }
 0x283   : > { %957 = vmatprep.mubr.f32.mxu0 %v3166_v1  ;;  %2262 = vmatprep.mubr.msk.f32.mxu1 %vm3167_vm0, %v3166_v1 }
 0x285   : > { %2580 = vmatpush1.bf16.msra.mxu0 %v3393_v15  ;;  %2610 = vmatpush3.bf16.msra.mxu1 %v3423_v34 }
 0x286   : > { %2582 = vmatprep.subr.bf16.mxu0 %v3396_v16  ;;  %2611 = vmatprep.subr.bf16.mxu1 %v3165_v0 }
 0x289   : > { %2584 = vmatpush1.bf16.msra.mxu0 %v3403_v21  ;;  %2613 = vmatpush3.bf16.msra.mxu1 %v3439_v43 }
 0x28a   : > { %2586 = vmatprep.subr.bf16.mxu0 %v3407_v23  ;;  %2614 = vmatprep.subr.bf16.mxu1 %v3165_v0 }
 0x28d   : > { %2588 = vmatpush1.bf16.msra.mxu0 %v3419_v32  ;;  %2616 = vmatpush3.bf16.msra.mxu1 %v3455_v52 }
 0x28e   : > { %2590 = vmatprep.subr.bf16.mxu0 %v3426_v35  ;;  %2617 = vmatprep.subr.bf16.mxu1 %v3165_v0 }
 0x291   : > { %2592 = vmatpush1.bf16.msra.mxu0 %v3435_v41  ;;  %2619 = vmatpush3.bf16.msra.mxu1 %v3471_v61 }
 0x292   : > { %2594 = vmatprep.subr.bf16.mxu0 %v3442_v44  ;;  %2620 = vmatprep.subr.bf16.mxu1 %v3165_v0 }
 0x295   : > { %2596 = vmatpush1.bf16.msra.mxu0 %v3451_v50  ;;  %2622 = vmatpush3.bf16.msra.mxu1 %v3484_v6 }
 0x296   : > { %2598 = vmatprep.subr.bf16.mxu0 %v3458_v53  ;;  %2623 = vmatprep.subr.bf16.mxu1 %v3165_v0 }
 0x299   : > { %2600 = vmatpush1.bf16.msra.mxu0 %v3467_v59  ;;  %2625 = vmatpush3.bf16.msra.mxu1 %v3492_v11 }
 0x29a   : > { %2602 = vmatprep.subr.bf16.mxu0 %v3474_v62  ;;  %2626 = vmatprep.subr.bf16.mxu1 %v3165_v0 }
 0x29d   : > { %2604 = vmatpush1.bf16.msra.mxu0 %v3481_v4  ;;  %2628 = vmatpush3.bf16.msra.mxu1 %v3500_v14 }
 0x29e   : > { %2630 = vmatprep.subr.bf16.mxu0 %v3378_v5  ;;  %2661 = vmatprep.subr.bf16.mxu1 %v3165_v0 }
 0x353   : > { %v784_v38 = vpop.f32.mrb[4].mxu0  ;;  %v855_v39 = vpop.f32.mrb[4].mxu1 }
 0x354   : > { %v859_v40 = vadd.f32 %v784_v38, %v714_v37  ;;  %v786_v45 = vpop.f32.mrb[5].mxu0  ;;  %v2229_v46 = vpop.f32.mrb[5].mxu1  ;;  %v873_v57 = vadd.f32 %v3553_v36, %v855_v39 }
 0x355   : > { %v866_v48 = vadd.f32 %v786_v45, %v715_v42  ;;  %v891_v42 = vld [vmem:[%s888_s10 + $0x10] sm:$0xff]  ;;  %s1986_s10 = smul.u32 24, %s3851_s30 }
 0x356   : > { %v1952_v47 = vmul.f32 -1.442695, %v859_v40 }
 0x357   : > { %v1953_v49 = vmul.f32 -1.442695, %v866_v48  ;;  %s1413_s21 = scalar_lea.vmem %s3357_s4, %s1986_s10 [#allocation3] }
 0x358   : > { %2953 = vpow2.f32 %v1952_v47 }
 0x359   : > { %2955 = vpow2.f32 %v1953_v49 }
 0x362   : > { %v2954_v51 = vpop.eup %2953 }
 0x363   : > { %v863_v54 = vadd.f32 1.0, %v2954_v51  ;;  %v2956_v55 = vpop.eup %2955 }
 0x364   : > { %v870_v56 = vadd.f32 1.0, %v2956_v55 }
 0x365   : > { %2957 = vrcp.f32 %v863_v54 }
 0x366   : > { %2959 = vrcp.f32 %v870_v56  ;;  %v1064_v56 = vld [vmem:[%s1063_s11] sm:$0xff] }
 0x36f   : > { %v2958_v58 = vpop.eup %2957 }
 0x370   : > { %v874_v63 = vmul.f32 %v2958_v58, %v873_v57  ;;  %v2960_v3 = vpop.eup %2959 }
 0x371   : > { %v877_v7 = vsub.f32 1.0, %v2960_v3  ;;  %v879_v13 = vmul.f32 %v2960_v3, %v3611_v33 }
 0x372   : > { %v875_v2 = vadd.f32 %v874_v63, %v716_v60  ;;  %v1065_v63 = vld [vmem:[%s1063_s11 + $0x8] sm:$0xff] }
 0x374   : > { %2961 = vtanh.f32 %v875_v2 }
 0x37e   : > { %v2962_v8 = vpop.eup %2961 }
 0x37f   : > { %v878_v12 = vmul.f32 %v2962_v8, %v877_v7 }
 0x381   : > { %v3661_v17 = vadd.f32 %v879_v13, %v878_v12 }
 0x383   : > { %884 = vst [vmem:[%s883_s23] sm:$0xff] %v3661_v17  ;;  %958 = vmatmul.mubr.f32.vlgmr.msra.gmra.mrb[6].mxu0 %v3661_v17  ;;  %2263 = vmatmul.mubr.f32.vlgmr.msra.gmra.mrb[6].mxu1 %v3661_v17  ;;  %s1966_s23 = sshll.u32 %s3803_s29, 3  ;;  %s1781_s29 = sshll.u32 %s3558_s6, 4  ;;  %s3875_s29 = int_to_ptr.vmem [resolvable:$true] %s1781_s29 }
 0x384   : > { %2632 = vmatpush1.bf16.msra.mxu0 %v3383_v9  ;;  %2663 = vmatpush3.bf16.msra.mxu1 %v3414_v29  ;;  %s1408_s18 = scalar_lea.vmem %s3558_s6, %s1966_s23 [#allocation8]  ;;  %s3073_s10 = scalar_lea.vmem %s3875_s29, 1024 }
 0x385   : > { %2634 = vmatprep.subr.bf16.mxu0 %v3385_v10  ;;  %2664 = vmatprep.subr.bf16.mxu1 %v3165_v0  ;;  %p3074_p12 = scmp.ne.s32.totalorder %s3875_s29, %s3073_s10 }
 0x386   : > { %1132 = vmatprep.mubr.f32.mxu0 %v3166_v1  ;;  %2297 = vmatprep.mubr.msk.f32.mxu1 %vm3167_vm0, %v3166_v1 }
 0x387   : > { %p3075_p7 = pnand %p3074_p12, %p3938_p13 }
 0x388   : > { %2636 = vmatpush1.bf16.msra.mxu0 %v3393_v15  ;;  %2666 = vmatpush3.bf16.msra.mxu1 %v3423_v34 }
 0x389   : > { %2638 = vmatprep.subr.bf16.mxu0 %v3396_v16  ;;  %2667 = vmatprep.subr.bf16.mxu1 %v3165_v0  ;;  %p3076_p10 = pneg %p3075_p7 }
 0x38c   : > { %2640 = vmatpush1.bf16.msra.mxu0 %v3403_v21  ;;  %2669 = vmatpush3.bf16.msra.mxu1 %v3439_v43 }
 0x38d   : > { %2642 = vmatprep.subr.bf16.mxu0 %v3407_v23  ;;  %2670 = vmatprep.subr.bf16.mxu1 %v3165_v0 }
 0x390   : > { %2644 = vmatpush1.bf16.msra.mxu0 %v3419_v32  ;;  %2672 = vmatpush3.bf16.msra.mxu1 %v3455_v52 }
 0x391   : > { %2646 = vmatprep.subr.bf16.mxu0 %v3426_v35  ;;  %2673 = vmatprep.subr.bf16.mxu1 %v3165_v0 }
 0x394   : > { %2648 = vmatpush1.bf16.msra.mxu0 %v3435_v41  ;;  %2675 = vmatpush3.bf16.msra.mxu1 %v3471_v61 }
 0x395   : > { %2650 = vmatprep.subr.bf16.mxu0 %v3442_v44  ;;  %2676 = vmatprep.subr.bf16.mxu1 %v3165_v0 }
 0x398   : > { %2652 = vmatpush1.bf16.msra.mxu0 %v3451_v50  ;;  %2678 = vmatpush3.bf16.msra.mxu1 %v3484_v6 }
 0x399   : > { %2654 = vmatprep.subr.bf16.mxu0 %v3458_v53  ;;  %2679 = vmatprep.subr.bf16.mxu1 %v3165_v0 }
 0x39c   : > { %2656 = vmatpush1.bf16.msra.mxu0 %v3467_v59  ;;  %2681 = vmatpush3.bf16.msra.mxu1 %v3492_v11 }
 0x39d   : > { %2658 = vmatprep.subr.bf16.mxu0 %v3474_v62  ;;  %2682 = vmatprep.subr.bf16.mxu1 %v3165_v0 }
 0x3a0   : > { %2660 = vmatpush1.bf16.msra.mxu0 %v3481_v4  ;;  %2684 = vmatpush3.bf16.msra.mxu1 %v3500_v14 }
 0x3a1   : > { %2686 = vmatprep.subr.bf16.mxu0 %v3378_v5  ;;  %2717 = vmatprep.subr.bf16.mxu1 %v3165_v0 }
 0x456   : > { %v959_v19 = vpop.f32.mrb[6].mxu0  ;;  %v1030_v20 = vpop.f32.mrb[6].mxu1 }
 0x457   : > { %v1034_v22 = vadd.f32 %v959_v19, %v889_v18  ;;  %v961_v25 = vpop.f32.mrb[7].mxu0  ;;  %v2264_v26 = vpop.f32.mrb[7].mxu1  ;;  %v1048_v39 = vadd.f32 %v3553_v36, %v1030_v20 }
 0x458   : > { %v1041_v28 = vadd.f32 %v961_v25, %v890_v24  ;;  %v1066_v24 = vld [vmem:[%s1063_s11 + $0x10] sm:$0xff]  ;;  %s1987_s11 = smul.u32 24, %s3861_s8 }
 0x459   : > { %v1956_v27 = vmul.f32 -1.442695, %v1034_v22 }
 0x45a   : > { %v1957_v30 = vmul.f32 -1.442695, %v1041_v28  ;;  %s1588_s24 = scalar_lea.vmem %s3357_s4, %s1987_s11 [#allocation3]  ;;  %s1974_s4 = sshll.u32 %s3861_s8, 3 }
 0x45b   : > { %2963 = vpow2.f32 %v1956_v27  ;;  %s1758_s5 = scalar_lea.vmem %s3558_s6, %s1974_s4 [#allocation8] }
 0x45c   : > { %2965 = vpow2.f32 %v1957_v30 }
 0x465   : > { %v2964_v31 = vpop.eup %2963 }
 0x466   : > { %v1038_v33 = vadd.f32 1.0, %v2964_v31  ;;  %v2966_v37 = vpop.eup %2965 }
 0x467   : > { %v1045_v38 = vadd.f32 1.0, %v2966_v37 }
 0x468   : > { %2967 = vrcp.f32 %v1038_v33 }
 0x469   : > { %2969 = vrcp.f32 %v1045_v38  ;;  %v1239_v38 = vld [vmem:[%s1238_s7] sm:$0xff] }
 0x472   : > { %v2968_v40 = vpop.eup %2967 }
 0x473   : > { %v1049_v45 = vmul.f32 %v2968_v40, %v1048_v39  ;;  %v2970_v47 = vpop.eup %2969 }
 0x474   : > { %v1052_v48 = vsub.f32 1.0, %v2970_v47  ;;  %v1054_v54 = vmul.f32 %v2970_v47, %v3661_v17 }
 0x475   : > { %v1050_v46 = vadd.f32 %v1049_v45, %v891_v42  ;;  %v1240_v45 = vld [vmem:[%s1238_s7 + $0x8] sm:$0xff] }
 0x477   : > { %2971 = vtanh.f32 %v1050_v46 }
 0x481   : > { %v2972_v49 = vpop.eup %2971 }
 0x482   : > { %v1053_v51 = vmul.f32 %v2972_v49, %v1052_v48 }
 0x484   : > { %v3711_v55 = vadd.f32 %v1054_v54, %v1053_v51 }
 0x486   : > { %1059 = vst [vmem:[%s1058_s22] sm:$0xff] %v3711_v55  ;;  %1133 = vmatmul.mubr.f32.vlgmr.msra.gmra.mrb[8].mxu0 %v3711_v55  ;;  %2298 = vmatmul.mubr.f32.vlgmr.msra.gmra.mrb[8].mxu1 %v3711_v55  ;;  %s1970_s22 = sshll.u32 %s3851_s30, 3  ;;  %s1761_s30 = scalar_lea.sflag [#allocation5], %s3353_s9 }
 0x487   : > { %2688 = vmatpush1.bf16.msra.mxu0 %v3383_v9  ;;  %2719 = vmatpush3.bf16.msra.mxu1 %v3414_v29  ;;  %s1583_s28 = scalar_lea.vmem %s3558_s6, %s1970_s22 [#allocation8] }
 0x488   : > { %2690 = vmatprep.subr.bf16.mxu0 %v3385_v10  ;;  %2720 = vmatprep.subr.bf16.mxu1 %v3165_v0 }
 0x489   : > { %1307 = vmatprep.mubr.f32.mxu0 %v3166_v1  ;;  %2332 = vmatprep.mubr.msk.f32.mxu1 %vm3167_vm0, %v3166_v1 }
 0x48b   : > { %2692 = vmatpush1.bf16.msra.mxu0 %v3393_v15  ;;  %2722 = vmatpush3.bf16.msra.mxu1 %v3423_v34 }
 0x48c   : > { %2694 = vmatprep.subr.bf16.mxu0 %v3396_v16  ;;  %2723 = vmatprep.subr.bf16.mxu1 %v3165_v0 }
 0x48f   : > { %2696 = vmatpush1.bf16.msra.mxu0 %v3403_v21  ;;  %2725 = vmatpush3.bf16.msra.mxu1 %v3439_v43 }
 0x490   : > { %2698 = vmatprep.subr.bf16.mxu0 %v3407_v23  ;;  %2726 = vmatprep.subr.bf16.mxu1 %v3165_v0 }
 0x493   : > { %2700 = vmatpush1.bf16.msra.mxu0 %v3419_v32  ;;  %2728 = vmatpush3.bf16.msra.mxu1 %v3455_v52 }
 0x494   : > { %2702 = vmatprep.subr.bf16.mxu0 %v3426_v35  ;;  %2729 = vmatprep.subr.bf16.mxu1 %v3165_v0 }
 0x497   : > { %2704 = vmatpush1.bf16.msra.mxu0 %v3435_v41  ;;  %2731 = vmatpush3.bf16.msra.mxu1 %v3471_v61 }
 0x498   : > { %2706 = vmatprep.subr.bf16.mxu0 %v3442_v44  ;;  %2732 = vmatprep.subr.bf16.mxu1 %v3165_v0 }
 0x49b   : > { %2708 = vmatpush1.bf16.msra.mxu0 %v3451_v50  ;;  %2734 = vmatpush3.bf16.msra.mxu1 %v3484_v6 }
 0x49c   : > { %2710 = vmatprep.subr.bf16.mxu0 %v3458_v53  ;;  %2735 = vmatprep.subr.bf16.mxu1 %v3165_v0 }
 0x49f   : > { %2712 = vmatpush1.bf16.msra.mxu0 %v3467_v59  ;;  %2737 = vmatpush3.bf16.msra.mxu1 %v3492_v11 }
 0x4a0   : > { %2714 = vmatprep.subr.bf16.mxu0 %v3474_v62  ;;  %2738 = vmatprep.subr.bf16.mxu1 %v3165_v0 }
 0x4a3   : > { %2716 = vmatpush1.bf16.msra.mxu0 %v3481_v4  ;;  %2740 = vmatpush3.bf16.msra.mxu1 %v3500_v14 }
 0x4a4   : > { %2742 = vmatprep.subr.bf16.mxu0 %v3378_v5  ;;  %2773 = vmatprep.subr.bf16.mxu1 %v3165_v0 }
 0x559   : > { %v1134_v57 = vpop.f32.mrb[8].mxu0  ;;  %v1205_v58 = vpop.f32.mrb[8].mxu1 }
 0x55a   : > { %v1209_v60 = vadd.f32 %v1134_v57, %v1064_v56  ;;  %v1136_v2 = vpop.f32.mrb[9].mxu0  ;;  %v2299_v3 = vpop.f32.mrb[9].mxu1  ;;  %v1223_v20 = vadd.f32 %v3553_v36, %v1205_v58 }
 0x55b   : > { %v1216_v8 = vadd.f32 %v1136_v2, %v1065_v63 }
 0x55c   : > { %v1960_v7 = vmul.f32 -1.442695, %v1209_v60  ;;  %v1241_v60 = vld [vmem:[%s1238_s7 + $0x10] sm:$0xff] }
 0x55d   : > { %v1961_v12 = vmul.f32 -1.442695, %v1216_v8 }
 0x55e   : > { %2973 = vpow2.f32 %v1960_v7 }
 0x55f   : > { %2975 = vpow2.f32 %v1961_v12 }
 0x568   : > { %v2974_v13 = vpop.eup %2973 }
 0x569   : > { %v1213_v17 = vadd.f32 1.0, %v2974_v13  ;;  %v2976_v18 = vpop.eup %2975 }
 0x56a   : > { %v1220_v19 = vadd.f32 1.0, %v2976_v18  ;;  %v1589_v18 = vld [vmem:[%s1588_s24] sm:$0xff] }
 0x56b   : > { %2977 = vrcp.f32 %v1213_v17 }
 0x56c   : > { %2979 = vrcp.f32 %v1220_v19 }
 0x575   : > { %v2978_v22 = vpop.eup %2977 }
 0x576   : > { %v1224_v25 = vmul.f32 %v2978_v22, %v1223_v20  ;;  %v2980_v27 = vpop.eup %2979 }
 0x577   : > { %v1227_v28 = vsub.f32 1.0, %v2980_v27  ;;  %v1229_v33 = vmul.f32 %v2980_v27, %v3711_v55 }
 0x578   : > { %v1225_v26 = vadd.f32 %v1224_v25, %v1066_v24  ;;  %v1590_v24 = vld [vmem:[%s1588_s24 + $0x8] sm:$0xff] }
 0x57a   : > { %2981 = vtanh.f32 %v1225_v26 }
 0x584   : > { %v2982_v30 = vpop.eup %2981 }
 0x585   : > { %v1228_v31 = vmul.f32 %v2982_v30, %v1227_v28 }
 0x587   : > { %v3761_v37 = vadd.f32 %v1229_v33, %v1228_v31 }
 0x589   : > { %1234 = vst [vmem:[%s1233_s19] sm:$0xff] %v3761_v37  ;;  %1308 = vmatmul.mubr.f32.vlgmr.msra.gmra.mrb[10].mxu0 %v3761_v37  ;;  %2333 = vmatmul.mubr.f32.vlgmr.msra.gmra.mrb[10].mxu1 %v3761_v37  ;;  %s1988_s19 = sshll.u32 %s3151_s15, 10  ;;  %s3168_s15 = smov [#allocation8]  }
 0x58a   : > { %2744 = vmatpush1.bf16.msra.mxu0 %v3383_v9  ;;  %2775 = vmatpush3.bf16.msra.mxu1 %v3414_v29  ;;  %s3077_s6 = sshll.u32 %s3168_s15, 4  ;;  %s3078_s6 = int_to_ptr.vmem [resolvable:$false] %s3077_s6 }
 0x58b   : > { %2746 = vmatprep.subr.bf16.mxu0 %v3385_v10  ;;  %2776 = vmatprep.subr.bf16.mxu1 %v3165_v0  ;;  %p3080_p9 = scmp.lt.s32.totalorder %s3875_s29, %s3078_s6 }
 0x58c   : > { %1482 = vmatprep.mubr.f32.mxu0 %v3166_v1  ;;  %2367 = vmatprep.mubr.msk.f32.mxu1 %vm3167_vm0, %v3166_v1 }
 0x58e   : > { %2748 = vmatpush1.bf16.msra.mxu0 %v3393_v15  ;;  %2778 = vmatpush3.bf16.msra.mxu1 %v3423_v34 }
 0x58f   : > { %2750 = vmatprep.subr.bf16.mxu0 %v3396_v16  ;;  %2779 = vmatprep.subr.bf16.mxu1 %v3165_v0 }
 0x592   : > { %2752 = vmatpush1.bf16.msra.mxu0 %v3403_v21  ;;  %2781 = vmatpush3.bf16.msra.mxu1 %v3439_v43 }
 0x593   : > { %2754 = vmatprep.subr.bf16.mxu0 %v3407_v23  ;;  %2782 = vmatprep.subr.bf16.mxu1 %v3165_v0 }
 0x596   : > { %2756 = vmatpush1.bf16.msra.mxu0 %v3419_v32  ;;  %2784 = vmatpush3.bf16.msra.mxu1 %v3455_v52 }
 0x597   : > { %2758 = vmatprep.subr.bf16.mxu0 %v3426_v35  ;;  %2785 = vmatprep.subr.bf16.mxu1 %v3165_v0 }
 0x59a   : > { %2760 = vmatpush1.bf16.msra.mxu0 %v3435_v41  ;;  %2787 = vmatpush3.bf16.msra.mxu1 %v3471_v61 }
 0x59b   : > { %2762 = vmatprep.subr.bf16.mxu0 %v3442_v44  ;;  %2788 = vmatprep.subr.bf16.mxu1 %v3165_v0 }
 0x59e   : > { %2764 = vmatpush1.bf16.msra.mxu0 %v3451_v50  ;;  %2790 = vmatpush3.bf16.msra.mxu1 %v3484_v6 }
 0x59f   : > { %2766 = vmatprep.subr.bf16.mxu0 %v3458_v53  ;;  %2791 = vmatprep.subr.bf16.mxu1 %v3165_v0 }
 0x5a2   : > { %2768 = vmatpush1.bf16.msra.mxu0 %v3467_v59  ;;  %2793 = vmatpush3.bf16.msra.mxu1 %v3492_v11 }
 0x5a3   : > { %2770 = vmatprep.subr.bf16.mxu0 %v3474_v62  ;;  %2794 = vmatprep.subr.bf16.mxu1 %v3165_v0 }
 0x5a6   : > { %2772 = vmatpush1.bf16.msra.mxu0 %v3481_v4  ;;  %2796 = vmatpush3.bf16.msra.mxu1 %v3500_v14 }
 0x5a7   : > { %2798 = vmatprep.subr.bf16.mxu0 %v3378_v5  ;;  %2829 = vmatprep.subr.bf16.mxu1 %v3165_v0 }
 0x65c   : > { %v1309_v39 = vpop.f32.mrb[10].mxu0  ;;  %v1380_v40 = vpop.f32.mrb[10].mxu1 }
 0x65d   : > { %v1384_v42 = vadd.f32 %v1309_v39, %v1239_v38  ;;  %v1311_v46 = vpop.f32.mrb[11].mxu0  ;;  %v2334_v47 = vpop.f32.mrb[11].mxu1  ;;  %v1398_v57 = vadd.f32 %v3553_v36, %v1380_v40 }
 0x65e   : > { %v1391_v49 = vadd.f32 %v1311_v46, %v1240_v45 }
 0x65f   : > { %v1964_v48 = vmul.f32 -1.442695, %v1384_v42  ;;  %v1591_v42 = vld [vmem:[%s1588_s24 + $0x10] sm:$0xff] }
 0x660   : > { %v1965_v5 = vmul.f32 -1.442695, %v1391_v49 }
 0x661   : > { %2983 = vpow2.f32 %v1964_v48 }
 0x662   : > { %2985 = vpow2.f32 %v1965_v5 }
 0x66b   : > { %v2984_v51 = vpop.eup %2983 }
 0x66c   : > { %v1388_v54 = vadd.f32 1.0, %v2984_v51  ;;  %v2986_v55 = vpop.eup %2985 }
 0x66d   : > { %v1395_v56 = vadd.f32 1.0, %v2986_v55 }
 0x66e   : > { %2987 = vrcp.f32 %v1388_v54 }
 0x66f   : > { %2989 = vrcp.f32 %v1395_v56 }
 0x678   : > { %v2988_v58 = vpop.eup %2987 }
 0x679   : > { %v1399_v63 = vmul.f32 %v2988_v58, %v1398_v57  ;;  %v2990_v3 = vpop.eup %2989 }
 0x67a   : > { %v1402_v7 = vsub.f32 1.0, %v2990_v3  ;;  %v1404_v13 = vmul.f32 %v2990_v3, %v3761_v37 }
 0x67b   : > { %v1400_v2 = vadd.f32 %v1399_v63, %v1241_v60 }
 0x67d   : > { %2991 = vtanh.f32 %v1400_v2 }
 0x687   : > { %v2992_v8 = vpop.eup %2991 }
 0x688   : > { %v1403_v12 = vmul.f32 %v2992_v8, %v1402_v7 }
 0x68a   : > { %v3811_v17 = vadd.f32 %v1404_v13, %v1403_v12 }
 0x68c   : > { %1409 = vst [vmem:[%s1408_s18] sm:$0xff] %v3811_v17  ;;  %1483 = vmatmul.mubr.f32.vlgmr.msra.gmra.mrb[12].mxu0 %v3811_v17  ;;  %2368 = vmatmul.mubr.f32.vlgmr.msra.gmra.mrb[12].mxu1 %v3811_v17  ;;  %s3873_s18 = scalar_lea.hbm %s3927_s3, %s1988_s19 }
 0x68d   : > { %2800 = vmatpush1.bf16.msra.mxu0 %v3383_v9  ;;  %2831 = vmatpush3.bf16.msra.mxu1 %v3414_v29 }
 0x68e   : > { %2802 = vmatprep.subr.bf16.mxu0 %v3385_v10  ;;  %2832 = vmatprep.subr.bf16.mxu1 %v3165_v0 }
 0x68f   : > { %1657 = vmatprep.mubr.f32.mxu0 %v3166_v1  ;;  %2402 = vmatprep.mubr.msk.f32.mxu1 %vm3167_vm0, %v3166_v1  ;;  %v1414_v1 = vld [vmem:[%s1413_s21] sm:$0xff] }
 0x691   : > { %2804 = vmatpush1.bf16.msra.mxu0 %v3393_v15  ;;  %2834 = vmatpush3.bf16.msra.mxu1 %v3423_v34 }
 0x692   : > { %2806 = vmatprep.subr.bf16.mxu0 %v3396_v16  ;;  %2835 = vmatprep.subr.bf16.mxu1 %v3165_v0  ;;  %v1415_v16 = vld [vmem:[%s1413_s21 + $0x8] sm:$0xff] }
 0x695   : > { %2808 = vmatpush1.bf16.msra.mxu0 %v3403_v21  ;;  %2837 = vmatpush3.bf16.msra.mxu1 %v3439_v43 }
 0x696   : > { %2810 = vmatprep.subr.bf16.mxu0 %v3407_v23  ;;  %2838 = vmatprep.subr.bf16.mxu1 %v3165_v0 }
 0x699   : > { %2812 = vmatpush1.bf16.msra.mxu0 %v3419_v32  ;;  %2840 = vmatpush3.bf16.msra.mxu1 %v3455_v52  ;;  %v1416_v52 = vld [vmem:[%s1413_s21 + $0x10] sm:$0xff]  ;;  %s3079_s21 = scalar_lea.vmem %s3078_s6, 2048 }
 0x69a   : > { %2814 = vmatprep.subr.bf16.mxu0 %v3426_v35  ;;  %2841 = vmatprep.subr.bf16.mxu1 %v3165_v0  ;;  %p3081_p11 = scmp.lt.s32.totalorder %s3079_s21, %s3073_s10 }
 0x69c   : > { %p3082_p1 = por %p3081_p11, %p3080_p9 }
 0x69d   : > { %2816 = vmatpush1.bf16.msra.mxu0 %v3435_v41  ;;  %2843 = vmatpush3.bf16.msra.mxu1 %v3471_v61 }
 0x69e   : > { %2818 = vmatprep.subr.bf16.mxu0 %v3442_v44  ;;  %2844 = vmatprep.subr.bf16.mxu1 %v3165_v0  ;;  %p3083_p5 = pnand %p3082_p1, %p3076_p10 }
 0x6a1   : > { %2820 = vmatpush1.bf16.msra.mxu0 %v3451_v50  ;;  %2846 = vmatpush3.bf16.msra.mxu1 %v3484_v6 }
 0x6a2   : > { %2822 = vmatprep.subr.bf16.mxu0 %v3458_v53  ;;  %2847 = vmatprep.subr.bf16.mxu1 %v3165_v0 }
 0x6a5   : > { %2824 = vmatpush1.bf16.msra.mxu0 %v3467_v59  ;;  %2849 = vmatpush3.bf16.msra.mxu1 %v3492_v11 }
 0x6a6   : > { %2826 = vmatprep.subr.bf16.mxu0 %v3474_v62  ;;  %2850 = vmatprep.subr.bf16.mxu1 %v3165_v0 }
 0x6a9   : > { %2828 = vmatpush1.bf16.msra.mxu0 %v3481_v4  ;;  %2852 = vmatpush3.bf16.msra.mxu1 %v3500_v14 }
 0x75f   : > { %v1484_v9 = vpop.f32.mrb[12].mxu0  ;;  %v1555_v10 = vpop.f32.mrb[12].mxu1 }
 0x760   : > { %v1559_v15 = vadd.f32 %v1484_v9, %v1414_v1  ;;  %v1486_v21 = vpop.f32.mrb[13].mxu0  ;;  %v2369_v23 = vpop.f32.mrb[13].mxu1  ;;  %v1573_v44 = vadd.f32 %v3553_v36, %v1555_v10 }
 0x761   : > { %v1566_v32 = vadd.f32 %v1486_v21, %v1415_v16 }
 0x762   : > { %v1968_v29 = vmul.f32 -1.442695, %v1559_v15 }
 0x763   : > { %v1969_v0 = vmul.f32 -1.442695, %v1566_v32 }
 0x764   : > { %2993 = vpow2.f32 %v1968_v29 }
 0x765   : > { %2995 = vpow2.f32 %v1969_v0 }
 0x76e   : > { %v2994_v34 = vpop.eup %2993 }
 0x76f   : > { %v1563_v35 = vadd.f32 1.0, %v2994_v34  ;;  %v2996_v41 = vpop.eup %2995 }
 0x770   : > { %v1570_v43 = vadd.f32 1.0, %v2996_v41 }
 0x771   : > { %2997 = vrcp.f32 %v1563_v35 }
 0x772   : > { %2999 = vrcp.f32 %v1570_v43 }
 0x77b   : > { %v2998_v50 = vpop.eup %2997 }
 0x77c   : > { %v1574_v53 = vmul.f32 %v2998_v50, %v1573_v44  ;;  %v3000_v61 = vpop.eup %2999 }
 0x77d   : > { %v1577_v62 = vsub.f32 1.0, %v3000_v61  ;;  %v1579_v11 = vmul.f32 %v3000_v61, %v3811_v17 }
 0x77e   : > { %v1575_v59 = vadd.f32 %v1574_v53, %v1416_v52 }
 0x780   : > { %3001 = vtanh.f32 %v1575_v59 }
 0x78a   : > { %v3002_v4 = vpop.eup %3001 }
 0x78b   : > { %v1578_v6 = vmul.f32 %v3002_v4, %v1577_v62 }
 0x78d   : > { %v1580_v14 = vadd.f32 %v1579_v11, %v1578_v6 }
 0x78f   : > { %1584 = vst [vmem:[%s1583_s28] sm:$0xff] %v1580_v14  ;;  %1658 = vmatmul.mubr.f32.vlgmr.msra.gmra.mrb[14].mxu0 %v1580_v14  ;;  %2403 = vmatmul.mubr.f32.vlgmr.msra.gmra.mrb[14].mxu1 %v1580_v14 }
 0x862   : > { %v1659_v19 = vpop.f32.mrb[14].mxu0  ;;  %v1730_v20 = vpop.f32.mrb[14].mxu1 }
 0x863   : > { %v1734_v22 = vadd.f32 %v1659_v19, %v1589_v18  ;;  %v1661_v25 = vpop.f32.mrb[15].mxu0  ;;  %v2404_v26 = vpop.f32.mrb[15].mxu1  ;;  %v1748_v39 = vadd.f32 %v3553_v36, %v1730_v20 }
 0x864   : > { %v1741_v28 = vadd.f32 %v1661_v25, %v1590_v24 }
 0x865   : > { %v1972_v27 = vmul.f32 -1.442695, %v1734_v22 }
 0x866   : > { %v1973_v30 = vmul.f32 -1.442695, %v1741_v28 }
 0x867   : > { %3003 = vpow2.f32 %v1972_v27 }
 0x868   : > { %3005 = vpow2.f32 %v1973_v30 }
 0x871   : > { %v3004_v31 = vpop.eup %3003 }
 0x872   : > { %v1738_v33 = vadd.f32 1.0, %v3004_v31  ;;  %v3006_v37 = vpop.eup %3005 }
 0x873   : > { %v1745_v38 = vadd.f32 1.0, %v3006_v37 }
 0x874   : > { %3007 = vrcp.f32 %v1738_v33 }
 0x875   : > { %3009 = vrcp.f32 %v1745_v38 }
 0x87e   : > { %v3008_v40 = vpop.eup %3007 }
 0x87f   : > { %v1749_v45 = vmul.f32 %v3008_v40, %v1748_v39  ;;  %v3010_v47 = vpop.eup %3009 }
 0x880   : > { %v1752_v48 = vsub.f32 1.0, %v3010_v47  ;;  %v1754_v51 = vmul.f32 %v3010_v47, %v1580_v14 }
 0x881   : > { %v1750_v46 = vadd.f32 %v1749_v45, %v1591_v42 }
 0x883   : > { %3011 = vtanh.f32 %v1750_v46 }
 0x88d   : > { %v3012_v49 = vpop.eup %3011 }
 0x88e   : > { %v1753_v5 = vmul.f32 %v3012_v49, %v1752_v48 }
 0x890   : > { %v1755_v36 = vadd.f32 %v1754_v51, %v1753_v5 }
 0x892   : > { %1759 = vst [vmem:[%s1758_s5] sm:$0xff] %v1755_v36 }
 0x893   : > { %3086 = shalt.err (!%p3083_p5)
}
 0x894   : > { %s3087_s22 = scalar_lea.hbm %s3873_s18, 1024  ;;  %s3091_s11 = scalar_lea.hbm %s3927_s3, 2048 }
 0x895   : > { %p3088_p2 = scmp.ne.s32.totalorder %s3873_s18, %s3087_s22  ;;  %p3092_p8 = scmp.lt.u32.totalorder %s3873_s18, %s3927_s3 }
 0x896   : > { %p3093_p0 = scmp.lt.u32.totalorder %s3091_s11, %s3087_s22  ;;  %p3095_p12 = scmp.lt.u32.totalorder %s3087_s22, %s3873_s18 }
 0x897   : > { %p3089_p4 = pnand %p3088_p2, %p3938_p13 }
 0x898   : > { %p3094_p3 = por %p3093_p0, %p3092_p8 }
 0x899   : > { %p3090_p6 = pneg %p3089_p4 }
 0x89a   : > { %p3096_p7 = por %p3095_p12, %p3094_p3 }
 0x89c   : > { %p3097_p10 = pnand %p3096_p7, %p3090_p6 }
 0x89e   : > { %3100 = shalt.err (!%p3097_p10)
}
 0x89f   : > { %s3169_s19 = smov 128   ;;  %s3170_s5 = smov 8  }
 0x8a0   : > { %2863 = dma.vmem_to_hbm [thread:$0]  (%p3938_p13), %s3875_s29, 1024, %s3873_s18, %s1761_s30, %s3169_s19, %s3169_s19, %s3170_s5  }
 0x8a1 PF: > { %s1796_s7 = sand.u32 1, %s3139_s12   ;;  %p3939_p9 = scmp.ne.s32.totalorder %s3933_s27, 0 }
 0x8a2   : > { %p3940_p11 = scmp.ge.s32.totalorder %s3159_s17, 2  ;;  %s1797_s23 = scalar_lea.sflag [#allocation5], %s1796_s7 }
 0x8a4   : > { %p2873_p1 = pnand %p3940_p11, %p3939_p9 }
 0x8a6   : > { %3134 = dma.done.wait (!%p2873_p1), %s1797_s23, 1024  }
 0x8a7   : > { %3136 = vsyncadd (!%p2873_p1), %s1797_s23, 4294966272  ;;  %s22_s17 = sadd.s32 1, %s3159_s17   ;;  %s3941_s12 = smov %s3143_s13 }
 0x8a8   : > { %p19_p5 = scmp.ge.s32.totalorder %s22_s17, 4   ;;  %s3942_s13 = smov %s3147_s14 }
 0x8a9   : > { %s3943_s14 = smov %s3247_s26  ;;  %s3944_s15 = smov %s3155_s16 }
 0x8aa   : > { %s3945_s16 = smov %s3947_s20  ;;  %21 = sbr.rel (!%p19_p5) target bundleno = 8 (0x8), region = 113 }
 0x8b1   :  { %1802 = vsyncpa [#allocation4], 1 }
 0x8b2   :  { %1804 = vsyncpa [#allocation4 + $0x1], 1 }
 0x8b3   :  { %1805 = vsyncpa [#allocation7], 1 }
 0x8b4   :  { %1807 = vsyncpa [#allocation7 + $0x1], 1 }
 0x8b5   :  { %1808 = vsyncpa [#allocation5], 1 }
 0x8b6   :  { %1810 = vsyncpa [#allocation5 + $0x1], 1 }

</bundles_post_ra>
